<compile_context>
chip_gen: v5e
topology: v5e:2x2
jax: 0.10.0
libtpu: 0.0.40
codegen_flags: <defaults>
</compile_context>

<pallas_src>
import functools

import jax
import jax.numpy as jnp
from jax.experimental import pallas as pl
from jax.experimental.pallas import tpu as pltpu

_NEG_SLOPE = 0.01
_IN, _H1, _H2, _OUT = 310, 256, 128, 64


def _leaky_relu_f32(v):
    return jnp.where(v >= 0, v, _NEG_SLOPE * v)


def _cfe_kernel(x_ref, w1_ref, b1_ref, w2_ref, b2_ref, w3_ref, b3_ref, o_ref):
    # x_ref : (TN, 310) bf16
    # wK_ref: (in, out) bf16   bK_ref: (1, out) f32
    # o_ref : (TN, 64) f32
    x = x_ref[...]

    h = jnp.dot(x, w1_ref[...], preferred_element_type=jnp.float32) + b1_ref[...]
    h = _leaky_relu_f32(h).astype(jnp.bfloat16)

    h = jnp.dot(h, w2_ref[...], preferred_element_type=jnp.float32) + b2_ref[...]
    h = _leaky_relu_f32(h).astype(jnp.bfloat16)

    h = jnp.dot(h, w3_ref[...], preferred_element_type=jnp.float32) + b3_ref[...]
    h = _leaky_relu_f32(h)

    o_ref[...] = h.astype(o_ref.dtype)


def _round_up(v, m):
    return ((v + m - 1) // m) * m


def _choose_tile(n, block_rows):
    """Pick the batch tile size.

    Small batches: one full-extent tile (exempt from the 8-sublane rule);
    per-step overhead dominates, splitting would only hurt.
    Mid/large batches: at least 2 grid steps so the "parallel" batch axis can
    shard across v7x's two TensorCores, capped at block_rows, multiple of 8.
    """
    split_threshold = min(1024, block_rows)
    if n <= split_threshold:
        return n
    tn = min(block_rows, _round_up(-(-n // 2), 8))
    return max(8, tn)


@functools.partial(jax.jit, static_argnames=("tn", "single_buffer_consts"))
def _cfe_pallas(x, w1_t, b1, w2_t, b2, w3_t, b3, *, tn, single_buffer_consts):
    n = x.shape[0]
    grid = (pl.cdiv(n, tn),)

    # bf16 MXU operands (no-ops if already pre-baked to bf16 outside).
    xb = x.astype(jnp.bfloat16)
    w1b = w1_t.astype(jnp.bfloat16)
    w2b = w2_t.astype(jnp.bfloat16)
    w3b = w3_t.astype(jnp.bfloat16)
    b1_2 = b1.reshape(1, _H1).astype(jnp.float32)
    b2_2 = b2.reshape(1, _H2).astype(jnp.float32)
    b3_2 = b3.reshape(1, _OUT).astype(jnp.float32)

    # Weights/biases have a constant index_map -> VMEM-resident for the whole
    # grid; single-buffer them to save VMEM + DMA descriptors.
    const_kwargs = {}
    if single_buffer_consts:
        const_kwargs = dict(pipeline_mode=pl.Buffered(1))

    def const_spec(shape):
        return pl.BlockSpec(shape, lambda i: (0, 0), **const_kwargs)

    return pl.pallas_call(
        _cfe_kernel,
        out_shape=jax.ShapeDtypeStruct((n, _OUT), jnp.float32),
        grid=grid,
        in_specs=[
            pl.BlockSpec((tn, _IN), lambda i: (i, 0)),   # x: streamed per tile
            const_spec((_IN, _H1)),
            const_spec((1, _H1)),
            const_spec((_H1, _H2)),
            const_spec((1, _H2)),
            const_spec((_H2, _OUT)),
            const_spec((1, _OUT)),
        ],
        out_specs=pl.BlockSpec((tn, _OUT), lambda i: (i, 0)),
        compiler_params=pltpu.CompilerParams(
            dimension_semantics=("parallel",),     # batch tiles independent
            vmem_limit_bytes=48 * 1024 * 1024,     # v7x-safe (64 MiB physical)
        ),
    )(xb, w1b, b1_2, w2b, b2_2, w3b, b3_2)


def cfe_forward(x, w1_t, b1, w2_t, b2, w3_t, b3, *, block_rows=2048):
    """CFE forward via the fused Pallas kernel.

    x:    (N, 310)
    wK_t: weights already in (in_features, out_features) layout, ideally
          pre-baked to bf16 outside the hot path.
    bK:   (out_features,)
    """
    n = x.shape[0]
    tn = _choose_tile(n, block_rows)
    try:
        return _cfe_pallas(x, w1_t, b1, w2_t, b2, w3_t, b3,
                           tn=tn, single_buffer_consts=True)
    except Exception:
        # jax version without BlockSpec pipeline_mode / Buffered(1) support:
        # fall back to default double-buffered specs for the resident consts.
        return _cfe_pallas(x, w1_t, b1, w2_t, b2, w3_t, b3,
                           tn=tn, single_buffer_consts=False)


@jax.jit
def _cfe_xla(x, w1_t, b1, w2_t, b2, w3_t, b3):
    """Plain-XLA path mirroring the kernel numerics (bf16 operands, f32 acc).

    Used both as the correctness reference and as the small-batch fallback
    (weight DMA + kernel launch overhead dominate for tiny N).
    """
    def layer(h, w, b):
        h = jnp.dot(h.astype(jnp.bfloat16), w.astype(jnp.bfloat16),
                    preferred_element_type=jnp.float32) + b.astype(jnp.float32)
        return _leaky_relu_f32(h)

    h = layer(x, w1_t, b1)
    h = layer(h, w2_t, b2)
    h = layer(h, w3_t, b3)
    return h


def cfe_forward_auto(x, w1_t, b1, w2_t, b2, w3_t, b3, *,
                     block_rows=2048, min_pallas_rows=256):
    """Dispatch: tiny batches -> plain XLA, otherwise the Pallas kernel."""
    if x.shape[0] < min_pallas_rows:
        return _cfe_xla(x, w1_t, b1, w2_t, b2, w3_t, b3)
    return cfe_forward(x, w1_t, b1, w2_t, b2, w3_t, b3, block_rows=block_rows)


def _init_linear(key, out_f, in_f):
    """nn.Linear default init: U(-1/sqrt(fan_in), ...), PyTorch (out,in) layout."""
    kw, kb = jax.random.split(key)
    bound = 1.0 / jnp.sqrt(jnp.float32(in_f))
    w = jax.random.uniform(kw, (out_f, in_f), jnp.float32, -bound, bound)
    b = jax.random.uniform(kb, (out_f,), jnp.float32, -bound, bound)
    return w, b


if __name__ == "__main__":
    key = jax.random.PRNGKey(0)
    kx, kx2, k1, k2, k3 = jax.random.split(key, 5)

    # Parameters in PyTorch (out, in) layout.
    w1, b1 = _init_linear(k1, _H1, _IN)
    w2, b2 = _init_linear(k2, _H2, _H1)
    w3, b3 = _init_linear(k3, _OUT, _H2)

    # One-time layout + dtype bake (outside the per-call hot path):
    # (out,in) f32 -> (in,out) bf16.
    w1_t = jnp.asarray(w1.T, dtype=jnp.bfloat16)
    w2_t = jnp.asarray(w2.T, dtype=jnp.bfloat16)
    w3_t = jnp.asarray(w3.T, dtype=jnp.bfloat16)

    def ref_f32(x):
        h = _leaky_relu_f32(x @ w1.T + b1)
        h = _leaky_relu_f32(h @ w2.T + b2)
        return _leaky_relu_f32(h @ w3.T + b3)

    # --- primary small-shape run (single full-extent tile) -----------------
    batch = 64
    x = jax.random.normal(kx, (batch, _IN), dtype=jnp.float32)

    out = cfe_forward(x, w1_t, b1, w2_t, b2, w3_t, b3)
    out = jax.block_until_ready(out)
    assert out.shape == (batch, _OUT)

    ref_mirror = _cfe_xla(x, w1_t, b1, w2_t, b2, w3_t, b3)
    assert jnp.allclose(out, ref_mirror, atol=2e-3, rtol=2e-3), "mismatch vs bf16 reference"
    assert jnp.allclose(out, ref_f32(x), atol=6e-2, rtol=6e-2), "mismatch vs f32 reference"

    # --- multi-step grid + partial last tile (exercises tiling path) -------
    batch2 = 200
    x2 = jax.random.normal(kx2, (batch2, _IN), dtype=jnp.float32)
    out2 = cfe_forward(x2, w1_t, b1, w2_t, b2, w3_t, b3, block_rows=64)
    out2 = jax.block_until_ready(out2)
    ref2 = _cfe_xla(x2, w1_t, b1, w2_t, b2, w3_t, b3)
    assert out2.shape == (batch2, _OUT)
    assert jnp.allclose(out2, ref2, atol=2e-3, rtol=2e-3), "mismatch on tiled path"

    print("KERNEL_OK")
</pallas_src>

<mosaic_0001>
module attributes {stable_mosaic.version = 11 : i64} {
  func.func @_cfe_kernel(%arg0: i32, %arg1: memref<64x310xbf16, #tpu.memory_space<vmem>>, %arg2: memref<310x256xbf16, #tpu.memory_space<vmem>>, %arg3: memref<1x256xf32, #tpu.memory_space<vmem>>, %arg4: memref<256x128xbf16, #tpu.memory_space<vmem>>, %arg5: memref<1x128xf32, #tpu.memory_space<vmem>>, %arg6: memref<128x64xbf16, #tpu.memory_space<vmem>>, %arg7: memref<1x64xf32, #tpu.memory_space<vmem>>, %arg8: memref<64x64xf32, #tpu.memory_space<vmem>>) attributes {dimension_semantics = [#tpu.dimension_semantics<parallel>], iteration_bounds = array<i64: 1>, scalar_prefetch = 0 : i64, scratch_operands = 0 : i64, tpu.core_type = #tpu.core_type<tc>, window_params = [{transform_indices = @transform_0, window_bounds = array<i64: 64, 310>}, {pipeline_mode = #tpu.pipeline_mode<synchronous>, transform_indices = @transform_1, window_bounds = array<i64: 310, 256>}, {pipeline_mode = #tpu.pipeline_mode<synchronous>, transform_indices = @transform_2, window_bounds = array<i64: 1, 256>}, {pipeline_mode = #tpu.pipeline_mode<synchronous>, transform_indices = @transform_3, window_bounds = array<i64: 256, 128>}, {pipeline_mode = #tpu.pipeline_mode<synchronous>, transform_indices = @transform_4, window_bounds = array<i64: 1, 128>}, {pipeline_mode = #tpu.pipeline_mode<synchronous>, transform_indices = @transform_5, window_bounds = array<i64: 128, 64>}, {pipeline_mode = #tpu.pipeline_mode<synchronous>, transform_indices = @transform_6, window_bounds = array<i64: 1, 64>}, {transform_indices = @transform_7, window_bounds = array<i64: 64, 64>}]} {
    %c0 = arith.constant 0 : index
    %c0_0 = arith.constant 0 : index
    %0 = vector.load %arg1[%c0, %c0_0] : memref<64x310xbf16, #tpu.memory_space<vmem>>, vector<64x310xbf16>
    %c0_1 = arith.constant 0 : index
    %c0_2 = arith.constant 0 : index
    %1 = vector.load %arg2[%c0_1, %c0_2] : memref<310x256xbf16, #tpu.memory_space<vmem>>, vector<310x256xbf16>
    %cst = arith.constant dense<0.000000e+00> : vector<64x256xf32>
    %2 = tpu.matmul %0, %1, %cst {dimension_numbers = #tpu.dot_dimension_numbers<[1], [0], [0], [1], [0, 0, 1, 1], [], []>} : vector<64x310xbf16>, vector<310x256xbf16>, vector<64x256xf32> -> vector<64x256xf32>
    %c0_3 = arith.constant 0 : index
    %c0_4 = arith.constant 0 : index
    %3 = vector.load %arg3[%c0_3, %c0_4] : memref<1x256xf32, #tpu.memory_space<vmem>>, vector<1x256xf32>
    %4 = vector.broadcast %3 : vector<1x256xf32> to vector<64x256xf32>
    %5 = arith.addf %2, %4 : vector<64x256xf32>
    %cst_5 = arith.constant 0.000000e+00 : f32
    %6 = vector.broadcast %cst_5 : f32 to vector<64x256xf32>
    %7 = arith.cmpf oge, %5, %6 : vector<64x256xf32>
    %cst_6 = arith.constant 0.00999999977 : f32
    %8 = vector.broadcast %cst_6 : f32 to vector<64x256xf32>
    %9 = arith.mulf %8, %5 : vector<64x256xf32>
    %10 = arith.select %7, %5, %9 : vector<64x256xi1>, vector<64x256xf32>
    %11 = arith.truncf %10 : vector<64x256xf32> to vector<64x256xbf16>
    %c0_7 = arith.constant 0 : index
    %c0_8 = arith.constant 0 : index
    %12 = vector.load %arg4[%c0_7, %c0_8] : memref<256x128xbf16, #tpu.memory_space<vmem>>, vector<256x128xbf16>
    %cst_9 = arith.constant dense<0.000000e+00> : vector<64x128xf32>
    %13 = tpu.matmul %11, %12, %cst_9 {dimension_numbers = #tpu.dot_dimension_numbers<[1], [0], [0], [1], [0, 0, 1, 1], [], []>} : vector<64x256xbf16>, vector<256x128xbf16>, vector<64x128xf32> -> vector<64x128xf32>
    %c0_10 = arith.constant 0 : index
    %c0_11 = arith.constant 0 : index
    %14 = vector.load %arg5[%c0_10, %c0_11] : memref<1x128xf32, #tpu.memory_space<vmem>>, vector<1x128xf32>
    %15 = vector.broadcast %14 : vector<1x128xf32> to vector<64x128xf32>
    %16 = arith.addf %13, %15 : vector<64x128xf32>
    %cst_12 = arith.constant 0.000000e+00 : f32
    %17 = vector.broadcast %cst_12 : f32 to vector<64x128xf32>
    %18 = arith.cmpf oge, %16, %17 : vector<64x128xf32>
    %cst_13 = arith.constant 0.00999999977 : f32
    %19 = vector.broadcast %cst_13 : f32 to vector<64x128xf32>
    %20 = arith.mulf %19, %16 : vector<64x128xf32>
    %21 = arith.select %18, %16, %20 : vector<64x128xi1>, vector<64x128xf32>
    %22 = arith.truncf %21 : vector<64x128xf32> to vector<64x128xbf16>
    %c0_14 = arith.constant 0 : index
    %c0_15 = arith.constant 0 : index
    %23 = vector.load %arg6[%c0_14, %c0_15] : memref<128x64xbf16, #tpu.memory_space<vmem>>, vector<128x64xbf16>
    %cst_16 = arith.constant dense<0.000000e+00> : vector<64x64xf32>
    %24 = tpu.matmul %22, %23, %cst_16 {dimension_numbers = #tpu.dot_dimension_numbers<[1], [0], [0], [1], [0, 0, 1, 1], [], []>} : vector<64x128xbf16>, vector<128x64xbf16>, vector<64x64xf32> -> vector<64x64xf32>
    %c0_17 = arith.constant 0 : index
    %c0_18 = arith.constant 0 : index
    %25 = vector.load %arg7[%c0_17, %c0_18] : memref<1x64xf32, #tpu.memory_space<vmem>>, vector<1x64xf32>
    %26 = vector.broadcast %25 : vector<1x64xf32> to vector<64x64xf32>
    %27 = arith.addf %24, %26 : vector<64x64xf32>
    %cst_19 = arith.constant 0.000000e+00 : f32
    %28 = vector.broadcast %cst_19 : f32 to vector<64x64xf32>
    %29 = arith.cmpf oge, %27, %28 : vector<64x64xf32>
    %cst_20 = arith.constant 0.00999999977 : f32
    %30 = vector.broadcast %cst_20 : f32 to vector<64x64xf32>
    %31 = arith.mulf %30, %27 : vector<64x64xf32>
    %32 = arith.select %29, %27, %31 : vector<64x64xi1>, vector<64x64xf32>
    %c0_21 = arith.constant 0 : index
    %c0_22 = arith.constant 0 : index
    %33 = vector.load %arg8[%c0_21, %c0_22] : memref<64x64xf32, #tpu.memory_space<vmem>>, vector<64x64xf32>
    tpu.vector_store %arg8[%c0_21, %c0_22], %32 {strides = array<i32>} : memref<64x64xf32, #tpu.memory_space<vmem>>, vector<64x64xf32>,
    return
  }
  func.func @transform_0(%arg0: i32) -> (i32, i32) {
    %c0_i32 = arith.constant 0 : i32
    %c0_i32_0 = arith.constant 0 : i32
    return %arg0, %c0_i32 : i32, i32
  }
  func.func @transform_1(%arg0: i32) -> (i32, i32) {
    %c0_i32 = arith.constant 0 : i32
    %c0_i32_0 = arith.constant 0 : i32
    %c0_i32_1 = arith.constant 0 : i32
    return %c0_i32, %c0_i32_0 : i32, i32
  }
  func.func @transform_2(%arg0: i32) -> (i32, i32) {
    %c0_i32 = arith.constant 0 : i32
    %c0_i32_0 = arith.constant 0 : i32
    %c0_i32_1 = arith.constant 0 : i32
    return %c0_i32, %c0_i32_0 : i32, i32
  }
  func.func @transform_3(%arg0: i32) -> (i32, i32) {
    %c0_i32 = arith.constant 0 : i32
    %c0_i32_0 = arith.constant 0 : i32
    %c0_i32_1 = arith.constant 0 : i32
    return %c0_i32, %c0_i32_0 : i32, i32
  }
  func.func @transform_4(%arg0: i32) -> (i32, i32) {
    %c0_i32 = arith.constant 0 : i32
    %c0_i32_0 = arith.constant 0 : i32
    %c0_i32_1 = arith.constant 0 : i32
    return %c0_i32, %c0_i32_0 : i32, i32
  }
  func.func @transform_5(%arg0: i32) -> (i32, i32) {
    %c0_i32 = arith.constant 0 : i32
    %c0_i32_0 = arith.constant 0 : i32
    %c0_i32_1 = arith.constant 0 : i32
    return %c0_i32, %c0_i32_0 : i32, i32
  }
  func.func @transform_6(%arg0: i32) -> (i32, i32) {
    %c0_i32 = arith.constant 0 : i32
    %c0_i32_0 = arith.constant 0 : i32
    %c0_i32_1 = arith.constant 0 : i32
    return %c0_i32, %c0_i32_0 : i32, i32
  }
  func.func @transform_7(%arg0: i32) -> (i32, i32) {
    %c0_i32 = arith.constant 0 : i32
    %c0_i32_0 = arith.constant 0 : i32
    return %arg0, %c0_i32 : i32, i32
  }
}

module attributes {stable_mosaic.version = 11 : i64} {
  func.func @_cfe_kernel(%arg0: i32, %arg1: memref<64x310xbf16, #tpu.memory_space<vmem>>, %arg2: memref<310x256xbf16, #tpu.memory_space<vmem>>, %arg3: memref<1x256xf32, #tpu.memory_space<vmem>>, %arg4: memref<256x128xbf16, #tpu.memory_space<vmem>>, %arg5: memref<1x128xf32, #tpu.memory_space<vmem>>, %arg6: memref<128x64xbf16, #tpu.memory_space<vmem>>, %arg7: memref<1x64xf32, #tpu.memory_space<vmem>>, %arg8: memref<64x64xf32, #tpu.memory_space<vmem>>) attributes {dimension_semantics = [#tpu.dimension_semantics<parallel>], iteration_bounds = array<i64: 1>, scalar_prefetch = 0 : i64, scratch_operands = 0 : i64, tpu.core_type = #tpu.core_type<tc>, window_params = [{transform_indices = @transform_0, window_bounds = array<i64: 64, 310>}, {pipeline_mode = #tpu.pipeline_mode<synchronous>, transform_indices = @transform_1, window_bounds = array<i64: 310, 256>}, {pipeline_mode = #tpu.pipeline_mode<synchronous>, transform_indices = @transform_2, window_bounds = array<i64: 1, 256>}, {pipeline_mode = #tpu.pipeline_mode<synchronous>, transform_indices = @transform_3, window_bounds = array<i64: 256, 128>}, {pipeline_mode = #tpu.pipeline_mode<synchronous>, transform_indices = @transform_4, window_bounds = array<i64: 1, 128>}, {pipeline_mode = #tpu.pipeline_mode<synchronous>, transform_indices = @transform_5, window_bounds = array<i64: 128, 64>}, {pipeline_mode = #tpu.pipeline_mode<synchronous>, transform_indices = @transform_6, window_bounds = array<i64: 1, 64>}, {transform_indices = @transform_7, window_bounds = array<i64: 64, 64>}]} {
    %c0 = arith.constant 0 : index
    %c0_0 = arith.constant 0 : index
    %0 = vector.load %arg1[%c0, %c0_0] : memref<64x310xbf16, #tpu.memory_space<vmem>>, vector<64x310xbf16>
    %c0_1 = arith.constant 0 : index
    %c0_2 = arith.constant 0 : index
    %1 = vector.load %arg2[%c0_1, %c0_2] : memref<310x256xbf16, #tpu.memory_space<vmem>>, vector<310x256xbf16>
    %cst = arith.constant dense<0.000000e+00> : vector<64x256xf32>
    %2 = tpu.matmul %0, %1, %cst {dimension_numbers = #tpu.dot_dimension_numbers<[1], [0], [0], [1], [0, 0, 1, 1], [], []>} : vector<64x310xbf16>, vector<310x256xbf16>, vector<64x256xf32> -> vector<64x256xf32>
    %c0_3 = arith.constant 0 : index
    %c0_4 = arith.constant 0 : index
    %3 = vector.load %arg3[%c0_3, %c0_4] : memref<1x256xf32, #tpu.memory_space<vmem>>, vector<1x256xf32>
    %4 = vector.broadcast %3 : vector<1x256xf32> to vector<64x256xf32>
    %5 = arith.addf %2, %4 : vector<64x256xf32>
    %cst_5 = arith.constant 0.000000e+00 : f32
    %6 = vector.broadcast %cst_5 : f32 to vector<64x256xf32>
    %7 = arith.cmpf oge, %5, %6 : vector<64x256xf32>
    %cst_6 = arith.constant 0.00999999977 : f32
    %8 = vector.broadcast %cst_6 : f32 to vector<64x256xf32>
    %9 = arith.mulf %8, %5 : vector<64x256xf32>
    %10 = arith.select %7, %5, %9 : vector<64x256xi1>, vector<64x256xf32>
    %11 = arith.truncf %10 : vector<64x256xf32> to vector<64x256xbf16>
    %c0_7 = arith.constant 0 : index
    %c0_8 = arith.constant 0 : index
    %12 = vector.load %arg4[%c0_7, %c0_8] : memref<256x128xbf16, #tpu.memory_space<vmem>>, vector<256x128xbf16>
    %cst_9 = arith.constant dense<0.000000e+00> : vector<64x128xf32>
    %13 = tpu.matmul %11, %12, %cst_9 {dimension_numbers = #tpu.dot_dimension_numbers<[1], [0], [0], [1], [0, 0, 1, 1], [], []>} : vector<64x256xbf16>, vector<256x128xbf16>, vector<64x128xf32> -> vector<64x128xf32>
    %c0_10 = arith.constant 0 : index
    %c0_11 = arith.constant 0 : index
    %14 = vector.load %arg5[%c0_10, %c0_11] : memref<1x128xf32, #tpu.memory_space<vmem>>, vector<1x128xf32>
    %15 = vector.broadcast %14 : vector<1x128xf32> to vector<64x128xf32>
    %16 = arith.addf %13, %15 : vector<64x128xf32>
    %cst_12 = arith.constant 0.000000e+00 : f32
    %17 = vector.broadcast %cst_12 : f32 to vector<64x128xf32>
    %18 = arith.cmpf oge, %16, %17 : vector<64x128xf32>
    %cst_13 = arith.constant 0.00999999977 : f32
    %19 = vector.broadcast %cst_13 : f32 to vector<64x128xf32>
    %20 = arith.mulf %19, %16 : vector<64x128xf32>
    %21 = arith.select %18, %16, %20 : vector<64x128xi1>, vector<64x128xf32>
    %22 = arith.truncf %21 : vector<64x128xf32> to vector<64x128xbf16>
    %c0_14 = arith.constant 0 : index
    %c0_15 = arith.constant 0 : index
    %23 = vector.load %arg6[%c0_14, %c0_15] : memref<128x64xbf16, #tpu.memory_space<vmem>>, vector<128x64xbf16>
    %cst_16 = arith.constant dense<0.000000e+00> : vector<64x64xf32>
    %24 = tpu.matmul %22, %23, %cst_16 {dimension_numbers = #tpu.dot_dimension_numbers<[1], [0], [0], [1], [0, 0, 1, 1], [], []>} : vector<64x128xbf16>, vector<128x64xbf16>, vector<64x64xf32> -> vector<64x64xf32>
    %c0_17 = arith.constant 0 : index
    %c0_18 = arith.constant 0 : index
    %25 = vector.load %arg7[%c0_17, %c0_18] : memref<1x64xf32, #tpu.memory_space<vmem>>, vector<1x64xf32>
    %26 = vector.broadcast %25 : vector<1x64xf32> to vector<64x64xf32>
    %27 = arith.addf %24, %26 : vector<64x64xf32>
    %cst_19 = arith.constant 0.000000e+00 : f32
    %28 = vector.broadcast %cst_19 : f32 to vector<64x64xf32>
    %29 = arith.cmpf oge, %27, %28 : vector<64x64xf32>
    %cst_20 = arith.constant 0.00999999977 : f32
    %30 = vector.broadcast %cst_20 : f32 to vector<64x64xf32>
    %31 = arith.mulf %30, %27 : vector<64x64xf32>
    %32 = arith.select %29, %27, %31 : vector<64x64xi1>, vector<64x64xf32>
    %c0_21 = arith.constant 0 : index
    %c0_22 = arith.constant 0 : index
    %33 = vector.load %arg8[%c0_21, %c0_22] : memref<64x64xf32, #tpu.memory_space<vmem>>, vector<64x64xf32>
    tpu.vector_store %arg8[%c0_21, %c0_22], %32 {strides = array<i32>} : memref<64x64xf32, #tpu.memory_space<vmem>>, vector<64x64xf32>,
    return
  }
  func.func @transform_0(%arg0: i32) -> (i32, i32) {
    %c0_i32 = arith.constant 0 : i32
    %c0_i32_0 = arith.constant 0 : i32
    return %arg0, %c0_i32 : i32, i32
  }
  func.func @transform_1(%arg0: i32) -> (i32, i32) {
    %c0_i32 = arith.constant 0 : i32
    %c0_i32_0 = arith.constant 0 : i32
    %c0_i32_1 = arith.constant 0 : i32
    return %c0_i32, %c0_i32_0 : i32, i32
  }
  func.func @transform_2(%arg0: i32) -> (i32, i32) {
    %c0_i32 = arith.constant 0 : i32
    %c0_i32_0 = arith.constant 0 : i32
    %c0_i32_1 = arith.constant 0 : i32
    return %c0_i32, %c0_i32_0 : i32, i32
  }
  func.func @transform_3(%arg0: i32) -> (i32, i32) {
    %c0_i32 = arith.constant 0 : i32
    %c0_i32_0 = arith.constant 0 : i32
    %c0_i32_1 = arith.constant 0 : i32
    return %c0_i32, %c0_i32_0 : i32, i32
  }
  func.func @transform_4(%arg0: i32) -> (i32, i32) {
    %c0_i32 = arith.constant 0 : i32
    %c0_i32_0 = arith.constant 0 : i32
    %c0_i32_1 = arith.constant 0 : i32
    return %c0_i32, %c0_i32_0 : i32, i32
  }
  func.func @transform_5(%arg0: i32) -> (i32, i32) {
    %c0_i32 = arith.constant 0 : i32
    %c0_i32_0 = arith.constant 0 : i32
    %c0_i32_1 = arith.constant 0 : i32
    return %c0_i32, %c0_i32_0 : i32, i32
  }
  func.func @transform_6(%arg0: i32) -> (i32, i32) {
    %c0_i32 = arith.constant 0 : i32
    %c0_i32_0 = arith.constant 0 : i32
    %c0_i32_1 = arith.constant 0 : i32
    return %c0_i32, %c0_i32_0 : i32, i32
  }
  func.func @transform_7(%arg0: i32) -> (i32, i32) {
    %c0_i32 = arith.constant 0 : i32
    %c0_i32_0 = arith.constant 0 : i32
    return %arg0, %c0_i32 : i32, i32
  }
}

</mosaic_0001>

<bundles_post_ra>
// kernel: _cfe_pallas.1
= control target key start
LH: loop header
LB: loop body
LE: loop exit
PB: predicated region body
PF: predicated region fallthrough
CT: control target
= control target key end

     0   :  { %12 = vsyncpa [#allocation3], 0  ;;  %s1905_s0 = inlined_call_operand.vmem [shape: bf16[64,310], index: 0, kind: input, shape index: {}]   ;;  %s1906_s1 = inlined_call_operand.vmem [shape: bf16[310,256], index: 1, kind: input, shape index: {}]   ;;  %s1907_s2 = inlined_call_operand.vmem [shape: f32[1,256], index: 2, kind: input, shape index: {}]   ;;  %s1908_s3 = inlined_call_operand.hbm [shape: bf16[256,128], index: 3, kind: input, shape index: {}]   ;;  %s1909_s4 = inlined_call_operand.vmem [shape: f32[1,128], index: 4, kind: input, shape index: {}]   ;;  %s1910_s5 = inlined_call_operand.vmem [shape: bf16[128,64], index: 5, kind: input, shape index: {}]   ;;  %s1911_s6 = inlined_call_operand.vmem [shape: f32[1,64], index: 6, kind: input, shape index: {}]   ;;  %s1912_s7 = inlined_call_operand.hbm [shape: f32[64,64], index: 7, kind: output, shape index: {}]  }
   0x1   :  { %13 = vsyncpa [#allocation4], 0  ;;  %s24_s26 = sshll.u32 %s1908_s3, 4  ;;  %s1419_s27 = smov [#allocation2]   ;;  %s25_s26 = int_to_ptr.hbm [resolvable:$true] %s24_s26 }
   0x2   :  { %s26_s28 = sshll.u32 %s1419_s27, 4  ;;  %s1420_s29 = smov 64   ;;  %s27_s28 = int_to_ptr.vmem [resolvable:$true] %s26_s28 }
   0x3   :  { %s1421_s30 = smov 4  }
   0x4   :  { %32 = dma.hbm_to_vmem [thread:$0]  %s25_s26, 2048, %s27_s28, [#allocation3], %s1420_s29, %s1420_s29, %s1421_s30  }
   0x5   :  { %1415 = dma.done.wait [#allocation3], 2048  }
   0x6   :  { %1416 = vsyncadd [#allocation3], 4294965248  ;;  %v1083_v0 = vld [vmem:[%s1906_s1 + $0x70] sm:$0xf]  ;;  %v1308_v1 = vld [vmem:[%s1906_s1 + $0x74] sm:$0xf0] }
   0x7   :  { %v1147_v2 = vld [vmem:[%s1906_s1 + $0xf0] sm:$0xf]  ;;  %v1084_v3 = vor.u32 %v1308_v1, %v1083_v0  ;;  %v1324_v4 = vld [vmem:[%s1906_s1 + $0xf4] sm:$0xf0]  ;;  %v1075_v5 = vld [vmem:[%s1906_s1 + $0x60] sm:$0xf] }
   0x8   :  { %v1306_v6 = vld [vmem:[%s1906_s1 + $0x64] sm:$0xf0]  ;;  %v1148_v7 = vor.u32 %v1324_v4, %v1147_v2  ;;  %v1139_v8 = vld [vmem:[%s1906_s1 + $0xe0] sm:$0xf]  ;;  %v1067_v12 = vld [vmem:[%s1906_s1 + $0x50] sm:$0xf] }
   0x9   :  { %v1322_v9 = vld [vmem:[%s1906_s1 + $0xe4] sm:$0xf0]  ;;  %380 = vmatpush.bf16.msra.mxu0 %v1084_v3  ;;  %v1076_v10 = vor.u32 %v1306_v6, %v1075_v5  ;;  %v1304_v13 = vld [vmem:[%s1906_s1 + $0x54] sm:$0xf0]  ;;  %v1131_v14 = vld [vmem:[%s1906_s1 + $0xd0] sm:$0xf] }
   0xa   :  { %409 = vmatpush.bf16.msra.mxu1 %v1148_v7  ;;  %v1140_v11 = vor.u32 %v1322_v9, %v1139_v8  ;;  %v1320_v15 = vld [vmem:[%s1906_s1 + $0xd4] sm:$0xf0]  ;;  %v1068_v16 = vor.u32 %v1304_v13, %v1067_v12  ;;  %v1059_v18 = vld [vmem:[%s1906_s1 + $0x40] sm:$0xf]  ;;  %v1302_v19 = vld [vmem:[%s1906_s1 + $0x44] sm:$0xf0] }
   0xb   :  { %v1132_v17 = vor.u32 %v1320_v15, %v1131_v14  ;;  %v1123_v20 = vld [vmem:[%s1906_s1 + $0xc0] sm:$0xf]  ;;  %v1318_v21 = vld [vmem:[%s1906_s1 + $0xc4] sm:$0xf0]  ;;  %v1060_v22 = vor.u32 %v1302_v19, %v1059_v18  ;;  %v1051_v23 = vld [vmem:[%s1906_s1 + $0x30] sm:$0xf] }
   0xc   :  { %v1522_v24 = vld [vmem:[%s1906_s1 + $0x130] sm:$0x77]  ;;  %v1124_v25 = vor.u32 %v1318_v21, %v1123_v20  ;;  %v1300_v26 = vld [vmem:[%s1906_s1 + $0x34] sm:$0xf0]  ;;  %vm373_vm0 = vcmask 1042432   ;;  %vm360_vm1 = vcmask 441344  }
   0xd   :  { %381 = vmatpush.bf16.msra.mxu0 %v1076_v10  ;;  %v1115_v27 = vld [vmem:[%s1906_s1 + $0xb0] sm:$0xf]  ;;  %v1316_v28 = vld [vmem:[%s1906_s1 + $0xb4] sm:$0xf0]  ;;  %v280_v29 = vunpack.c.l.b16 %v1522_v24  ;;  %v1052_v31 = vor.u32 %v1300_v26, %v1051_v23  ;;  %v1043_v33 = vld [vmem:[%s1906_s1 + $0x20] sm:$0xf]  ;;  %v281_v6 = vunpack.c.h.b16 %v1522_v24 }
   0xe   :  { %410 = vmatpush.bf16.msra.mxu1 %v1140_v11  ;;  %v1116_v32 = vor.u32 %v1316_v28, %v1115_v27  ;;  %v1298_v34 = vld [vmem:[%s1906_s1 + $0x24] sm:$0xf0]  ;;  %v1107_v36 = vld [vmem:[%s1906_s1 + $0xa0] sm:$0xf]  ;;  %v1163_v42 = vld [vmem:[%s1906_s1 + $0x110] sm:$0xf] }
   0xf   :  { %v320_v30 = vpack.c.b16 %v280_v29, %v280_v29  ;;  %v1314_v37 = vld [vmem:[%s1906_s1 + $0xa4] sm:$0xf0]  ;;  %v1171_v38 = vld [vmem:[%s1906_s1 + $0x120] sm:$0xf]  ;;  %v1044_v40 = vor.u32 %v1298_v34, %v1043_v33  ;;  %v1328_v43 = vld [vmem:[%s1906_s1 + $0x114] sm:$0xf0]  ;;  %v321_v10 = vpack.c.b16 %v281_v6, %v281_v6 }
  0x10   :  { %v1330_v39 = vld [vmem:[%s1906_s1 + $0x124] sm:$0xf0]  ;;  %v1108_v44 = vor.u32 %v1314_v37, %v1107_v36  ;;  %v1035_v45 = vld [vmem:[%s1906_s1 + $0x10] sm:$0xf]  ;;  %v1296_v46 = vld [vmem:[%s1906_s1 + $0x14] sm:$0xf0]  ;;  %v1164_v49 = vor.u32 %v1328_v43, %v1163_v42 }
  0x11   :  { %382 = vmatpush.bf16.msra.mxu0 %v1068_v16  ;;  %v375_v35 = vsel %vm373_vm0, %v320_v30, 0  ;;  %v1172_v41 = vor.u32 %v1330_v39, %v1171_v38  ;;  %v1099_v47 = vld [vmem:[%s1906_s1 + $0x90] sm:$0xf]  ;;  %v1312_v48 = vld [vmem:[%s1906_s1 + $0x94] sm:$0xf0]  ;;  %v1036_v52 = vor.u32 %v1296_v46, %v1035_v45  ;;  %v378_v11 = vsel %vm373_vm0, %v321_v10, 0 }
  0x12   :  { %411 = vmatpush.bf16.msra.mxu1 %v1132_v17  ;;  %1355 = vmatpush.bf16.msra.mxu2 %v375_v35  ;;  %v1155_v50 = vld [vmem:[%s1906_s1 + $0x100] sm:$0xf]  ;;  %v1326_v51 = vld [vmem:[%s1906_s1 + $0x104] sm:$0xf0]  ;;  %v1100_v53 = vor.u32 %v1312_v48, %v1099_v47  ;;  %v1011_v59 = vld [vmem:[%s1905_s0 + $0x38] sm:$0xf] }
  0x13   :  { %v1027_v54 = vld [vmem:[%s1906_s1] sm:$0xf]  ;;  %v1294_v55 = vld [vmem:[%s1906_s1 + $0x4] sm:$0xf0]  ;;  %v1156_v58 = vor.u32 %v1326_v51, %v1155_v50  ;;  %v1289_v60 = vld [vmem:[%s1905_s0 + $0x40] sm:$0xf0] }
  0x14   :  { %v1091_v56 = vld [vmem:[%s1906_s1 + $0x80] sm:$0xf]  ;;  %v1310_v57 = vld [vmem:[%s1906_s1 + $0x84] sm:$0xf0]  ;;  %v1028_v61 = vor.u32 %v1294_v55, %v1027_v54  ;;  %v1282_v63 = vld [vmem:[%s1905_s0 + $0x8] sm:$0xf0]  ;;  %v1607_v3 = vor.u32 %v1289_v60, %v1011_v59 }
  0x15   :  { %383 = vmatpush.bf16.msra.mxu0 %v1060_v22  ;;  %v979_v62 = vld [vmem:[%s1905_s0] sm:$0xf]  ;;  %v1092_v0 = vor.u32 %v1310_v57, %v1091_v56  ;;  %v1281_v1 = vld [vmem:[%s1905_s0 + $0x4] sm:$0xf]  ;;  %v981_v2 = vld [vmem:[%s1905_s0 + $0xc] sm:$0xf0] }
  0x16   :  { %412 = vmatpush.bf16.msra.mxu1 %v1124_v25  ;;  %1356 = vmatpush.bf16.msra.mxu2 %v1172_v41  ;;  %v1609_v4 = vor.u32 %v1282_v63, %v979_v62  ;;  %v1611_v5 = vor.u32 %v1281_v1, %v981_v2  ;;  %v1307_v7 = vld [vmem:[%s1906_s1 + $0x74] sm:$0xf]  ;;  %v1085_v8 = vld [vmem:[%s1906_s1 + $0x78] sm:$0xf0]  ;;  %v1023_v12 = vld [vmem:[%s1905_s0 + $0x50] sm:$0xf] }
  0x17   :  { %v1088_v9 = vor.u32 %v1307_v7, %v1085_v8  ;;  %v1292_v13 = vld [vmem:[%s1905_s0 + $0x58] sm:$0xf0]  ;;  %v991_v14 = vld [vmem:[%s1905_s0 + $0x18] sm:$0xf]  ;;  %v1285_v15 = vld [vmem:[%s1905_s0 + $0x20] sm:$0xf0] }
  0x18   :  { %v1284_v16 = vld [vmem:[%s1905_s0 + $0x1c] sm:$0xf]  ;;  %v993_v17 = vld [vmem:[%s1905_s0 + $0x24] sm:$0xf0]  ;;  %v1643_v18 = vor.u32 %v1292_v13, %v1023_v12  ;;  %v1645_v19 = vor.u32 %v1285_v15, %v991_v14  ;;  %v1323_v21 = vld [vmem:[%s1906_s1 + $0xf4] sm:$0xf] }
  0x19   :  { %384 = vmatpush.bf16.msra.mxu0 %v1052_v31  ;;  %467 = vmatpush.bf16.msra.mxu3 %v1088_v9  ;;  %v1647_v20 = vor.u32 %v1284_v16, %v993_v17  ;;  %v1149_v22 = vld [vmem:[%s1906_s1 + $0xf8] sm:$0xf0]  ;;  %v1305_v24 = vld [vmem:[%s1906_s1 + $0x64] sm:$0xf]  ;;  %v1077_v25 = vld [vmem:[%s1906_s1 + $0x68] sm:$0xf0] }
  0x1a   :  { %413 = vmatpush.bf16.msra.mxu1 %v1116_v32  ;;  %1357 = vmatpush.bf16.msra.mxu2 %v1164_v49  ;;  %v1152_v23 = vor.u32 %v1323_v21, %v1149_v22  ;;  %v1080_v26 = vor.u32 %v1305_v24, %v1077_v25  ;;  %v1321_v27 = vld [vmem:[%s1906_s1 + $0xe4] sm:$0xf]  ;;  %v1141_v28 = vld [vmem:[%s1906_s1 + $0xe8] sm:$0xf0]  ;;  %v1303_v29 = vld [vmem:[%s1906_s1 + $0x54] sm:$0xf] }
  0x1b   :  { %v1144_v30 = vor.u32 %v1321_v27, %v1141_v28  ;;  %v1069_v31 = vld [vmem:[%s1906_s1 + $0x58] sm:$0xf0]  ;;  %v1319_v32 = vld [vmem:[%s1906_s1 + $0xd4] sm:$0xf]  ;;  %v1061_v36 = vld [vmem:[%s1906_s1 + $0x48] sm:$0xf0] }
  0x1c   :  { %v1133_v33 = vld [vmem:[%s1906_s1 + $0xd8] sm:$0xf0]  ;;  %v1072_v34 = vor.u32 %v1303_v29, %v1069_v31  ;;  %v1317_v38 = vld [vmem:[%s1906_s1 + $0xc4] sm:$0xf]  ;;  %v1125_v39 = vld [vmem:[%s1906_s1 + $0xc8] sm:$0xf0] }
  0x1d   :  { %385 = vmatpush.bf16.msra.mxu0 %v1044_v40  ;;  %468 = vmatpush.bf16.msra.mxu3 %v1080_v26  ;;  %v1136_v37 = vor.u32 %v1319_v32, %v1133_v33  ;;  %v1053_v42 = vld [vmem:[%s1906_s1 + $0x38] sm:$0xf0]  ;;  %v1003_v43 = vld [vmem:[%s1905_s0 + $0x30] sm:$0xf]  ;;  %v1128_v45 = vor.u32 %v1317_v38, %v1125_v39  ;;  %v1287_v46 = vld [vmem:[%s1905_s0 + $0x34] sm:$0xf] }
  0x1e   :  { %414 = vmatpush.bf16.msra.mxu1 %v1108_v44  ;;  %1358 = vmatpush.bf16.msra.mxu2 %v1156_v58  ;;  %v1288_v44 = vld [vmem:[%s1905_s0 + $0x38] sm:$0xf0]  ;;  %v1005_v47 = vld [vmem:[%s1905_s0 + $0x3c] sm:$0xf0]  ;;  %v1315_v51 = vld [vmem:[%s1906_s1 + $0xb4] sm:$0xf] }
  0x1f   :  { %v1715_v50 = vor.u32 %v1287_v46, %v1005_v47  ;;  %v1297_v54 = vld [vmem:[%s1906_s1 + $0x24] sm:$0xf]  ;;  %v1045_v55 = vld [vmem:[%s1906_s1 + $0x28] sm:$0xf0]  ;;  %v1295_v59 = vld [vmem:[%s1906_s1 + $0x14] sm:$0xf] }
  0x20   :  { %v1313_v56 = vld [vmem:[%s1906_s1 + $0xa4] sm:$0xf]  ;;  %v1048_v57 = vor.u32 %v1297_v54, %v1045_v55  ;;  %v1037_v60 = vld [vmem:[%s1906_s1 + $0x18] sm:$0xf0]  ;;  %v1173_v63 = vld [vmem:[%s1906_s1 + $0x128] sm:$0xf0] }
  0x21   :  { %386 = vmatpush.bf16.msra.mxu0 %v1036_v52  ;;  %1179 = vmatmul.msk.bf16.vlgmr.msra.gmra.mxu2 %vm360_vm1, %v1607_v3  ;;  %v1117_v52 = vld [vmem:[%s1906_s1 + $0xb8] sm:$0xf0]  ;;  %v1329_v62 = vld [vmem:[%s1906_s1 + $0x124] sm:$0xf]  ;;  %v1040_v1 = vor.u32 %v1295_v59, %v1037_v60  ;;  %v1029_v8 = vld [vmem:[%s1906_s1 + $0x8] sm:$0xf0] }
  0x22   :  { %415 = vmatpush.bf16.msra.mxu1 %v1100_v53  ;;  %496 = vmatpush.bf16.msrb.mxu2 %v1152_v23  ;;  %v1120_v53 = vor.u32 %v1315_v51, %v1117_v52  ;;  %v1176_v2 = vor.u32 %v1329_v62, %v1173_v63  ;;  %v1101_v6 = vld [vmem:[%s1906_s1 + $0x98] sm:$0xf0]  ;;  %v1293_v7 = vld [vmem:[%s1906_s1 + $0x4] sm:$0xf]  ;;  %v1015_v13 = vld [vmem:[%s1905_s0 + $0x48] sm:$0xf] }
  0x23   :  { %469 = vmatpush.bf16.msra.mxu3 %v1072_v34  ;;  %v1309_v10 = vld [vmem:[%s1906_s1 + $0x84] sm:$0xf]  ;;  %v1032_v12 = vor.u32 %v1293_v7, %v1029_v8  ;;  %v1291_v14 = vld [vmem:[%s1905_s0 + $0x50] sm:$0xf0]  ;;  %v1290_v16 = vld [vmem:[%s1905_s0 + $0x4c] sm:$0xf] }
  0x24   :  { %v1017_v17 = vld [vmem:[%s1905_s0 + $0x54] sm:$0xf0]  ;;  %v1016_v21 = vor.u32 %v1291_v14, %v1015_v13  ;;  %v1327_v23 = vld [vmem:[%s1906_s1 + $0x114] sm:$0xf]  ;;  %v1165_v24 = vld [vmem:[%s1906_s1 + $0x118] sm:$0xf0] }
  0x25   :  { %387 = vmatpush.bf16.msra.mxu0 %v1028_v61  ;;  %v1020_v22 = vor.u32 %v1290_v16, %v1017_v17  ;;  %v1325_v25 = vld [vmem:[%s1906_s1 + $0x104] sm:$0xf]  ;;  %v1168_v26 = vor.u32 %v1327_v23, %v1165_v24  ;;  %v987_v27 = vld [vmem:[%s1905_s0 + $0x8] sm:$0xf]  ;;  %v1283_v28 = vld [vmem:[%s1905_s0 + $0x10] sm:$0xf0] }
  0x26   :  { %416 = vmatpush.bf16.msra.mxu1 %v1092_v0  ;;  %497 = vmatpush.bf16.msrb.mxu2 %v1144_v30  ;;  %v1311_v0 = vld [vmem:[%s1906_s1 + $0x94] sm:$0xf]  ;;  %v988_v29 = vor.u32 %v1283_v28, %v987_v27  ;;  %v999_v30 = vld [vmem:[%s1905_s0 + $0x20] sm:$0xf]  ;;  %v1286_v31 = vld [vmem:[%s1905_s0 + $0x28] sm:$0xf0] }
  0x27   :  { %v1104_v9 = vor.u32 %v1311_v0, %v1101_v6  ;;  %v1000_v32 = vor.u32 %v1286_v31, %v999_v30  ;;  %v1338_v33 = vld [vmem:[#allocation2 + $0x38] sm:$0xff]  ;;  %v1345_v39 = vld [vmem:[#allocation2 + $0x70] sm:$0xff]  ;;  %v1343_v47 = vld [vmem:[#allocation2 + $0x60] sm:$0xff]  ;;  %s964_s3 = sshll.u32 %s1912_s7, 4  ;;  %s1424_s14 = smov 8   ;;  %s965_s3 = int_to_ptr.hbm [resolvable:$true] %s964_s3 }
  0x28   :  { %388 = vmatmul.bf16.vlgmr.msra.gmra.mxu0 %v1609_v4  ;;  %v1342_v52 = vld [vmem:[#allocation2 + $0x58] sm:$0xff]  ;;  %v1340_v0 = vld [vmem:[#allocation2 + $0x48] sm:$0xff] }
  0x29   :  { %442 = vmatpush.bf16.msrb.mxu0 %v375_v35  ;;  %417 = vmatmul.bf16.vlgmr.msra.gmra.mxu1 %v1611_v5  ;;  %v1301_v35 = vld [vmem:[%s1906_s1 + $0x44] sm:$0xf] }
  0x2a   :  { %v1064_v40 = vor.u32 %v1301_v35, %v1061_v36  ;;  %498 = vmatpush.bf16.msrb.mxu2 %v1136_v37  ;;  %v1346_v35 = vld [vmem:[#allocation2 + $0x78] sm:$0xff]  ;;  %742 = vmatpush.bf16.msrb.mxu1 %v1338_v33  ;;  %v1337_v36 = vld [vmem:[#allocation2 + $0x30] sm:$0xff]  ;;  %v1336_v37 = vld [vmem:[#allocation2 + $0x28] sm:$0xff] }
  0x2c   :  { %470 = vmatpush.bf16.msra.mxu3 %v1064_v40  ;;  %v1335_v40 = vld [vmem:[#allocation2 + $0x20] sm:$0xff] }
  0x2d   :  { %443 = vmatpush.bf16.msrb.mxu0 %v1172_v41  ;;  %v1299_v41 = vld [vmem:[%s1906_s1 + $0x34] sm:$0xf] }
  0x2e   :  { %v1056_v48 = vor.u32 %v1299_v41, %v1053_v42  ;;  %499 = vmatpush.bf16.msrb.mxu2 %v1128_v45  ;;  %743 = vmatpush.bf16.msrb.mxu1 %v1337_v36  ;;  %v1344_v42 = vld [vmem:[#allocation2 + $0x68] sm:$0xff] }
  0x30   :  { %471 = vmatpush.bf16.msra.mxu3 %v1056_v48  ;;  %v1331_v48 = vld [vmem:[#allocation2] sm:$0xff] }
  0x31   :  { %444 = vmatpush.bf16.msrb.mxu0 %v1164_v49  ;;  %1180 = vmatmul.msk.bf16.gmra.mxu2 %vm360_vm1, %v1643_v18  ;;  %v1713_v49 = vor.u32 %v1288_v44, %v1003_v43  ;;  %v1333_v43 = vld [vmem:[#allocation2 + $0x10] sm:$0xff] }
  0x32   :  { %500 = vmatpush.bf16.msrb.mxu2 %v1120_v53  ;;  %744 = vmatpush.bf16.msrb.mxu1 %v1336_v37  ;;  %v99_v53 = vld [vmem:[%s1907_s2] sm:$0x3] }
  0x33   :  { %v1843_v30 = vperm.slane %v99_v53, 1 }
  0x34   :  { %472 = vmatpush.bf16.msra.mxu3 %v1048_v57  ;;  %v1341_v57 = vld [vmem:[#allocation2 + $0x50] sm:$0xff] }
  0x35   :  { %445 = vmatpush.bf16.msrb.mxu0 %v1156_v58  ;;  %v1109_v58 = vld [vmem:[%s1906_s1 + $0xa8] sm:$0xf0] }
  0x36   :  { %v1112_v61 = vor.u32 %v1313_v56, %v1109_v58  ;;  %745 = vmatpush.bf16.msrb.mxu1 %v1335_v40  ;;  %v1832_v56 = vperm.slane %v99_v53, 0 }
  0x38   :  { %393 = vmatmul.bf16.gmra.mxu0 %v1645_v19  ;;  %501 = vmatpush.bf16.msrb.mxu2 %v1112_v61 }
  0x39   :  { %529 = vmatpush.bf16.msra.mxu0 %v378_v11  ;;  %422 = vmatmul.bf16.gmra.mxu1 %v1647_v20  ;;  %v1093_v11 = vld [vmem:[%s1906_s1 + $0x88] sm:$0xf0] }
  0x3a   :  { %473 = vmatpush.bf16.msra.mxu3 %v1040_v1  ;;  %v1096_v15 = vor.u32 %v1309_v10, %v1093_v11 }
  0x3c   :  { %502 = vmatpush.bf16.msrb.mxu2 %v1104_v9 }
  0x3d   :  { %530 = vmatpush.bf16.msra.mxu0 %v1176_v2 }
  0x3e   :  { %474 = vmatpush.bf16.msra.mxu3 %v1032_v12  ;;  %v1339_v12 = vld [vmem:[#allocation2 + $0x40] sm:$0xff] }
  0x40   :  { %503 = vmatpush.bf16.msrb.mxu2 %v1096_v15 }
  0x41   :  { %475 = vmatmul.bf16.vlgmr.msra.gmra.mxu3 %v1609_v4  ;;  %v1157_v4 = vld [vmem:[%s1906_s1 + $0x108] sm:$0xf0]  ;;  %531 = vmatpush.bf16.msra.mxu0 %v1168_v26  ;;  %s1423_s1 = smov 128  }
  0x42   :  { %771 = vmatpush.bf16.msrb.mxu3 %v1346_v35 }
  0x43   :  { %504 = vmatmul.bf16.vlgmr.msrb.gmra.mxu2 %v1611_v5  ;;  %v1160_v5 = vor.u32 %v1325_v25, %v1157_v4 }
  0x45   :  { %532 = vmatpush.bf16.msra.mxu0 %v1160_v5 }
  0x46   :  { %772 = vmatpush.bf16.msrb.mxu3 %v1345_v39 }
  0x48   :  { %398 = vmatmul.bf16.gmra.mxu0 %v1713_v49 }
  0x49   :  { %427 = vmatmul.bf16.gmra.mxu1 %v1715_v50 }
  0x4a   :  { %773 = vmatpush.bf16.msrb.mxu3 %v1344_v42 }
  0x4e   :  { %774 = vmatpush.bf16.msrb.mxu3 %v1343_v47 }
  0x51   :  { %480 = vmatmul.bf16.gmra.mxu3 %v1645_v19 }
  0x52   :  { %775 = vmatpush.bf16.msrb.mxu3 %v1342_v52 }
  0x53   :  { %509 = vmatmul.bf16.gmra.mxu2 %v1647_v20 }
  0x56   :  { %776 = vmatpush.bf16.msrb.mxu3 %v1341_v57 }
  0x58   :  { %403 = vmatmul.bf16.gmra.mxu0 %v1016_v21 }
  0x59   :  { %432 = vmatmul.bf16.gmra.mxu1 %v1020_v22 }
  0x5a   :  { %777 = vmatpush.bf16.msrb.mxu3 %v1340_v0 }
  0x5e   :  { %778 = vmatpush.bf16.msrb.mxu3 %v1339_v12 }
  0x61   :  { %485 = vmatmul.bf16.gmra.mxu3 %v1713_v49 }
  0x63   :  { %514 = vmatmul.bf16.gmra.mxu2 %v1715_v50 }
  0x68   :  { %1177 = vmatmul.msk.bf16.vlgmr.msrb.gmra.mxu0 %vm360_vm1, %v988_v29 }
  0x71   :  { %490 = vmatmul.bf16.gmra.mxu3 %v1016_v21 }
  0x73   :  { %519 = vmatmul.bf16.gmra.mxu2 %v1020_v22 }
  0x78   :  { %1178 = vmatmul.msk.bf16.gmra.mxu0 %vm360_vm1, %v1000_v32 }
  0x88   :  { %1181 = vmatmul.msk.bf16.vlgmr.msra.gmra.mxu0 %vm360_vm1, %v988_v29 }
  0x98   :  { %1182 = vmatmul.msk.bf16.gmra.mxu0 %vm360_vm1, %v1000_v32 }
  0xa4   :  { %v1821_v45 = vpop.f32.mrf.mxu2 }
  0xa5   :  { %v389_v19 = vpop.f32.mrf.mxu0 }
  0xa6   :  { %v418_v44 = vpop.f32.mrf.mxu1  ;;  %v390_v59 = vadd.f32 %v389_v19, %v1832_v56 }
  0xa8   :  { %1183 = vmatmul.msk.bf16.gmra.mxu0 %vm360_vm1, %v1607_v3  ;;  %v1334_v3 = vld [vmem:[#allocation2 + $0x18] sm:$0xff]  ;;  %v419_v61 = vadd.f32 %v418_v44, %v390_v59 }
  0xa9   :  { %746 = vmatpush.bf16.msrb.mxu1 %v1334_v3 }
  0xac   :  { %v1825_v51 = vpop.f32.mrf.mxu2 }
  0xad   :  { %v391_v20 = vpop.f32.mrf.mxu0  ;;  %747 = vmatpush.bf16.msrb.mxu1 %v1333_v43 }
  0xae   :  { %v420_v49 = vpop.f32.mrf.mxu1  ;;  %v392_v62 = vadd.f32 %v391_v20, %v1832_v56 }
  0xb0   :  { %v421_v6 = vadd.f32 %v420_v49, %v392_v62 }
  0xb4   :  { %v1834_v58 = vpop.f32.mrf.mxu2 }
  0xb5   :  { %v1815_v34 = vpop.f32.mrf.mxu0 }
  0xb6   :  { %v423_v55 = vpop.f32.mrf.mxu1  ;;  %v395_v21 = vadd.f32 %v1815_v34, %v1832_v56 }
  0xb8   :  { %1184 = vmatmul.msk.bf16.gmra.mxu0 %vm360_vm1, %v1643_v18  ;;  %v1332_v18 = vld [vmem:[#allocation2 + $0x8] sm:$0xff]  ;;  %v424_v23 = vadd.f32 %v423_v55, %v395_v21 }
  0xb9   :  { %748 = vmatpush.bf16.msrb.mxu1 %v1332_v18 }
  0xbc   :  { %v1838_v2 = vpop.f32.mrf.mxu2 }
  0xbd   :  { %v396_v38 = vpop.f32.mrf.mxu0  ;;  %749 = vmatpush.bf16.msrb.mxu1 %v1331_v48 }
  0xbe   :  { %v425_v63 = vpop.f32.mrf.mxu1  ;;  %v397_v24 = vadd.f32 %v396_v38, %v1832_v56 }
  0xc0   :  { %v426_v4 = vadd.f32 %v425_v63, %v397_v24 }
  0xc4   :  { %v476_v10 = vpop.f32.mrf.mxu3 }
  0xc5   :  { %v1819_v41 = vpop.f32.mrf.mxu0  ;;  %v477_v33 = vadd.f32 %v476_v10, %v1843_v30 }
  0xc6   :  { %v428_v13 = vpop.f32.mrf.mxu1  ;;  %v505_v17 = vpop.f32.mrf.mxu2  ;;  %v400_v20 = vadd.f32 %v1819_v41, %v1832_v56 }
  0xc7   :  { %v506_v3 = vadd.f32 %v505_v17, %v477_v33  ;;  %v1353_v33 = vld [vmem:[%s1910_s5 + $0x30] sm:$0xff] }
  0xc8   :  { %v429_v39 = vadd.f32 %v428_v13, %v400_v20 }
  0xcc   :  { %v478_v25 = vpop.f32.mrf.mxu3 }
  0xcd   :  { %v401_v46 = vpop.f32.mrf.mxu0  ;;  %v479_v18 = vadd.f32 %v478_v25, %v1843_v30 }
  0xce   :  { %v430_v5 = vpop.f32.mrf.mxu1  ;;  %v507_v28 = vpop.f32.mrf.mxu2  ;;  %v402_v32 = vadd.f32 %v401_v46, %v1832_v56  ;;  %v458_v46 = vadd.f32 %v1821_v45, %v429_v39 }
  0xcf   :  { %v508_v48 = vadd.f32 %v507_v28, %v479_v18 }
  0xd0   :  { %v431_v38 = vadd.f32 %v430_v5, %v402_v32  ;;  %v578_v49 = vmul.f32 0.01, %v458_v46  ;;  %vm562_vm7 = vcmp.ge.f32.partialorder %v458_v46, 0.0 }
  0xd2   :  { %v460_v44 = vadd.f32 %v1825_v51, %v431_v38  ;;  %v594_v45 = vsel %vm562_vm7, %v458_v46, %v578_v49 }
  0xd4   :  { %v481_v37 = vpop.f32.mrf.mxu3  ;;  %v580_v47 = vmul.f32 0.01, %v460_v44  ;;  %vm564_vm6 = vcmp.ge.f32.partialorder %v460_v44, 0.0 }
  0xd5   :  { %v1823_v50 = vpop.f32.mrf.mxu0  ;;  %v482_v0 = vadd.f32 %v481_v37, %v1843_v30 }
  0xd6   :  { %v433_v42 = vpop.f32.mrf.mxu1  ;;  %v510_v43 = vpop.f32.mrf.mxu2  ;;  %v405_v63 = vadd.f32 %v1823_v50, %v1832_v56 }
  0xdc   :  { %v483_v53 = vpop.f32.mrf.mxu3 }
  0xdd   :  { %v1830_v54 = vpop.f32.mrf.mxu0 }
  0xde   :  { %v407_v59 = vadd.f32 %v1830_v54, %v1832_v56  ;;  %v512_v62 = vpop.f32.mrf.mxu2  ;;  %v434_v54 = vadd.f32 %v433_v42, %v405_v63  ;;  %v1352_v63 = vld [vmem:[%s1910_s5 + $0x28] sm:$0xff] }
  0xe4   :  { %v486_v12 = vpop.f32.mrf.mxu3 }
  0xe5   :  { %v447_v60 = vpop.f32.mrf.mxu0 }
  0xe6   :  { %v448_v1 = vadd.f32 %v447_v60, %v419_v61  ;;  %v596_v60 = vsel %vm564_vm6, %v460_v44, %v580_v47  ;;  %v435_v61 = vpop.f32.mrf.mxu1  ;;  %v515_v56 = vpop.f32.mrf.mxu2 }
  0xe8   :  { %v570_v8 = vmul.f32 0.01, %v448_v1  ;;  %vm554_vm2 = vcmp.ge.f32.partialorder %v448_v1, 0.0 }
  0xea   :  { %v586_v14 = vsel %vm554_vm2, %v448_v1, %v570_v8 }
  0xed   :  { %v449_v7 = vpop.f32.mrf.mxu0 }
  0xee   :  { %v450_v9 = vadd.f32 %v449_v7, %v421_v6  ;;  %v606_v7 = vpack.c.bf16 %v596_v60, %v594_v45 }
  0xf0   :  { %vm556_vm3 = vcmp.ge.f32.partialorder %v450_v9, 0.0  ;;  %v572_v11 = vmul.f32 0.01, %v450_v9 }
  0xf2   :  { %v588_v15 = vsel %vm556_vm3, %v450_v9, %v572_v11  ;;  %v436_v9 = vadd.f32 %v435_v61, %v407_v59  ;;  %v511_v11 = vadd.f32 %v510_v43, %v482_v0  ;;  %v1350_v0 = vld [vmem:[%s1910_s5 + $0x18] sm:$0xff] }
  0xf3   :  { %v602_v16 = vpack.c.bf16 %v588_v15, %v586_v14  ;;  %v484_v14 = vadd.f32 %v483_v53, %v1843_v30  ;;  %v463_v15 = vadd.f32 %v1834_v58, %v434_v54 }
  0xf4   :  { %v465_v13 = vadd.f32 %v1838_v2, %v436_v9  ;;  %v487_v2 = vadd.f32 %v486_v12, %v1843_v30 }
  0xf5   :  { %v452_v22 = vpop.f32.mrf.mxu0  ;;  %750 = vmatmul.bf16.vlgmr.msrb.gmra.mxu1 %v602_v16  ;;  %v513_v17 = vadd.f32 %v512_v62, %v484_v14  ;;  %vm566_vm11 = vcmp.ge.f32.partialorder %v463_v15, 0.0 }
  0xf6   :  { %v453_v26 = vadd.f32 %v452_v22, %v424_v23  ;;  %v584_v16 = vmul.f32 0.01, %v465_v13  ;;  %vm568_vm10 = vcmp.ge.f32.partialorder %v465_v13, 0.0  ;;  %v582_v22 = vmul.f32 0.01, %v463_v15 }
  0xf7   :  { %v516_v20 = vadd.f32 %v515_v56, %v487_v2 }
  0xf8   :  { %v574_v29 = vmul.f32 0.01, %v453_v26  ;;  %vm558_vm4 = vcmp.ge.f32.partialorder %v453_v26, 0.0  ;;  %v598_v5 = vsel %vm566_vm11, %v463_v15, %v582_v22  ;;  %vm949_vm11 = vcmask 523264  }
  0xfa   :  { %v590_v34 = vsel %vm558_vm4, %v453_v26, %v574_v29  ;;  %v600_v26 = vsel %vm568_vm10, %v465_v13, %v584_v16 }
  0xfb   :  { %v608_v28 = vpack.c.bf16 %v600_v26, %v598_v5 }
  0xfd   :  { %v454_v27 = vpop.f32.mrf.mxu0 }
  0xfe   :  { %v455_v31 = vadd.f32 %v454_v27, %v426_v4  ;;  %v488_v4 = vpop.f32.mrf.mxu3 }
 0x100   :  { %v576_v19 = vmul.f32 0.01, %v455_v31  ;;  %vm560_vm5 = vcmp.ge.f32.partialorder %v455_v31, 0.0 }
 0x102   :  { %v592_v35 = vsel %vm560_vm5, %v455_v31, %v576_v19  ;;  %v517_v31 = vpop.f32.mrf.mxu2  ;;  %v1354_v19 = vld [vmem:[%s1910_s5 + $0x38] sm:$0xff] }
 0x103   :  { %v604_v36 = vpack.c.bf16 %v592_v35, %v590_v34  ;;  %896 = vmatpush.bf16.msra.mxu2 %v1354_v19  ;;  %v489_v34 = vadd.f32 %v488_v4, %v1843_v30 }
 0x105   :  { %v534_v40 = vpop.f32.mrf.mxu0  ;;  %755 = vmatmul.bf16.gmra.mxu1 %v604_v36  ;;  %v518_v37 = vadd.f32 %v517_v31, %v489_v34 }
 0x106   :  { %v535_v41 = vadd.f32 %v534_v40, %v506_v3  ;;  %v491_v36 = vpop.f32.mrf.mxu3 }
 0x107   :  { %897 = vmatpush.bf16.msra.mxu2 %v1353_v33  ;;  %v492_v43 = vadd.f32 %v491_v36, %v1843_v30 }
 0x108   :  { %v571_v55 = vmul.f32 0.01, %v535_v41  ;;  %vm555_vm8 = vcmp.ge.f32.partialorder %v535_v41, 0.0 }
 0x10a   :  { %v587_v1 = vsel %vm555_vm8, %v535_v41, %v571_v55  ;;  %v520_v3 = vpop.f32.mrf.mxu2 }
 0x10b   :  { %898 = vmatpush.bf16.msra.mxu2 %v1352_v63 }
 0x10d   :  { %v536_v52 = vpop.f32.mrf.mxu0 }
 0x10e   :  { %v537_v57 = vadd.f32 %v536_v52, %v508_v48  ;;  %v493_v41 = vpop.f32.mrf.mxu3  ;;  %v521_v48 = vadd.f32 %v520_v3, %v492_v43 }
 0x10f   :  { %v494_v49 = vadd.f32 %v493_v41, %v1843_v30  ;;  %v1351_v30 = vld [vmem:[%s1910_s5 + $0x20] sm:$0xff] }
 0x110   :  { %vm557_vm9 = vcmp.ge.f32.partialorder %v537_v57, 0.0  ;;  %v573_v51 = vmul.f32 0.01, %v537_v57  ;;  %899 = vmatpush.bf16.msra.mxu2 %v1351_v30 }
 0x112   :  { %v589_v6 = vsel %vm557_vm9, %v537_v57, %v573_v51  ;;  %v522_v52 = vpop.f32.mrf.mxu2 }
 0x113   :  { %v603_v8 = vpack.c.bf16 %v589_v6, %v587_v1  ;;  %v523_v55 = vadd.f32 %v522_v52, %v494_v49  ;;  %v1349_v1 = vld [vmem:[%s1910_s5 + $0x10] sm:$0xff]  ;;  %v1348_v6 = vld [vmem:[%s1910_s5 + $0x8] sm:$0xff] }
 0x114   :  { %900 = vmatpush.bf16.msra.mxu2 %v1350_v0 }
 0x115   :  { %v539_v10 = vpop.f32.mrf.mxu0  ;;  %760 = vmatmul.bf16.gmra.mxu1 %v606_v7  ;;  %779 = vmatmul.bf16.vlgmr.msrb.gmra.mxu3 %v603_v8  ;;  %v1347_v7 = vld [vmem:[%s1910_s5] sm:$0xff] }
 0x116   :  { %v540_v50 = vadd.f32 %v539_v10, %v511_v11  ;;  %v1365_v10 = vld [vmem:[%s1909_s4] ss:$0 sm:$0xff] }
 0x118   :  { %v575_v23 = vmul.f32 0.01, %v540_v50  ;;  %vm559_vm12 = vcmp.ge.f32.partialorder %v540_v50, 0.0  ;;  %901 = vmatpush.bf16.msra.mxu2 %v1349_v1 }
 0x11a   :  { %v591_v27 = vsel %vm559_vm12, %v540_v50, %v575_v23 }
 0x11c   :  { %902 = vmatpush.bf16.msra.mxu2 %v1348_v6 }
 0x11d   :  { %v541_v21 = vpop.f32.mrf.mxu0 }
 0x11e   :  { %v542_v24 = vadd.f32 %v541_v21, %v513_v17 }
 0x120   :  { %v577_v25 = vmul.f32 0.01, %v542_v24  ;;  %vm561_vm13 = vcmp.ge.f32.partialorder %v542_v24, 0.0  ;;  %903 = vmatpush.bf16.msra.mxu2 %v1347_v7 }
 0x122   :  { %v593_v58 = vsel %vm561_vm13, %v542_v24, %v577_v25 }
 0x123   :  { %v605_v29 = vpack.c.bf16 %v593_v58, %v591_v27 }
 0x125   :  { %v544_v32 = vpop.f32.mrf.mxu0  ;;  %765 = vmatmul.bf16.gmra.mxu1 %v608_v28  ;;  %784 = vmatmul.bf16.gmra.mxu3 %v605_v29 }
 0x126   :  { %v545_v35 = vadd.f32 %v544_v32, %v516_v20 }
 0x128   :  { %v579_v39 = vmul.f32 0.01, %v545_v35  ;;  %vm563_vm14 = vcmp.ge.f32.partialorder %v545_v35, 0.0 }
 0x12a   :  { %v595_v44 = vsel %vm563_vm14, %v545_v35, %v579_v39 }
 0x12d   :  { %v546_v38 = vpop.f32.mrf.mxu0 }
 0x12e   :  { %v547_v40 = vadd.f32 %v546_v38, %v518_v37 }
 0x130   :  { %v581_v42 = vmul.f32 0.01, %v547_v40  ;;  %vm565_vm15 = vcmp.ge.f32.partialorder %v547_v40, 0.0 }
 0x132   :  { %v597_v18 = vsel %vm565_vm15, %v547_v40, %v581_v42 }
 0x133   :  { %v607_v46 = vpack.c.bf16 %v597_v18, %v595_v44 }
 0x135   :  { %v549_v47 = vpop.f32.mrf.mxu0  ;;  %789 = vmatmul.bf16.gmra.mxu3 %v607_v46 }
 0x136   :  { %v550_v53 = vadd.f32 %v549_v47, %v521_v48 }
 0x138   :  { %v583_v59 = vmul.f32 0.01, %v550_v53  ;;  %vm567_vm0 = vcmp.ge.f32.partialorder %v550_v53, 0.0 }
 0x13a   :  { %v599_v61 = vsel %vm567_vm0, %v550_v53, %v583_v59 }
 0x13d   :  { %v551_v57 = vpop.f32.mrf.mxu0 }
 0x13e   :  { %v552_v51 = vadd.f32 %v551_v57, %v523_v55 }
 0x140   :  { %v585_v60 = vmul.f32 0.01, %v552_v51  ;;  %vm569_vm1 = vcmp.ge.f32.partialorder %v552_v51, 0.0 }
 0x142   :  { %v601_v62 = vsel %vm569_vm1, %v552_v51, %v585_v60  ;;  %v1366_v51 = vld [vmem:[%s1911_s6] ss:$0 sm:$0xff]  ;;  %s1422_s6 = smov [#allocation5]  }
 0x143   :  { %v609_v45 = vpack.c.bf16 %v601_v62, %v599_v61  ;;  %s962_s11 = sshll.u32 %s1422_s6, 4  ;;  %s963_s11 = int_to_ptr.vmem [resolvable:$true] %s962_s11 }
 0x145   :  { %794 = vmatmul.bf16.gmra.mxu3 %v609_v45 }
 0x172   :  { %v751_v8 = vpop.f32.mrf.mxu1 }
 0x173   :  { %v752_v12 = vadd.f32 %v1365_v10, %v751_v8 }
 0x17a   :  { %v753_v9 = vpop.f32.mrf.mxu1 }
 0x17b   :  { %v754_v14 = vadd.f32 %v1365_v10, %v753_v9 }
 0x182   :  { %v756_v11 = vpop.f32.mrf.mxu1 }
 0x183   :  { %v757_v25 = vadd.f32 %v1365_v10, %v756_v11 }
 0x18a   :  { %v758_v17 = vpop.f32.mrf.mxu1 }
 0x18b   :  { %v759_v2 = vadd.f32 %v1365_v10, %v758_v17 }
 0x192   :  { %v761_v4 = vpop.f32.mrf.mxu1 }
 0x193   :  { %v762_v33 = vadd.f32 %v1365_v10, %v761_v4 }
 0x198   :  { %v780_v54 = vpop.f32.mrf.mxu3 }
 0x199   :  { %v781_v13 = vadd.f32 %v780_v54, %v752_v12 }
 0x19a   :  { %v763_v19 = vpop.f32.mrf.mxu1 }
 0x19b   :  { %v808_v50 = vmul.f32 0.01, %v781_v13  ;;  %vm800_vm2 = vcmp.ge.f32.partialorder %v781_v13, 0.0  ;;  %v764_v35 = vadd.f32 %v1365_v10, %v763_v19 }
 0x19d   :  { %v816_v21 = vsel %vm800_vm2, %v781_v13, %v808_v50 }
 0x1a0   :  { %v782_v15 = vpop.f32.mrf.mxu3 }
 0x1a1   :  { %v783_v56 = vadd.f32 %v782_v15, %v754_v14 }
 0x1a2   :  { %v766_v39 = vpop.f32.mrf.mxu1 }
 0x1a3   :  { %vm801_vm3 = vcmp.ge.f32.partialorder %v783_v56, 0.0  ;;  %v809_v16 = vmul.f32 0.01, %v783_v56  ;;  %v767_v18 = vadd.f32 %v1365_v10, %v766_v39 }
 0x1a5   :  { %v817_v22 = vsel %vm801_vm3, %v783_v56, %v809_v16 }
 0x1a6   :  { %v824_v23 = vpack.c.bf16 %v817_v22, %v816_v21 }
 0x1a8   :  { %v785_v24 = vpop.f32.mrf.mxu3  ;;  %904 = vmatmul.bf16.vlgmr.msra.gmra.mxu2 %v824_v23 }
 0x1a9   :  { %v786_v26 = vadd.f32 %v785_v24, %v757_v25 }
 0x1aa   :  { %v768_v46 = vpop.f32.mrf.mxu1 }
 0x1ab   :  { %v810_v27 = vmul.f32 0.01, %v786_v26  ;;  %vm802_vm4 = vcmp.ge.f32.partialorder %v786_v26, 0.0  ;;  %v769_v47 = vadd.f32 %v1365_v10, %v768_v46 }
 0x1ad   :  { %v818_v29 = vsel %vm802_vm4, %v786_v26, %v810_v27 }
 0x1b0   :  { %v787_v5 = vpop.f32.mrf.mxu3 }
 0x1b1   :  { %v788_v58 = vadd.f32 %v787_v5, %v759_v2 }
 0x1b3   :  { %v811_v28 = vmul.f32 0.01, %v788_v58  ;;  %vm803_vm5 = vcmp.ge.f32.partialorder %v788_v58, 0.0 }
 0x1b5   :  { %v819_v31 = vsel %vm803_vm5, %v788_v58, %v811_v28 }
 0x1b6   :  { %v825_v32 = vpack.c.bf16 %v819_v31, %v818_v29 }
 0x1b8   :  { %v790_v20 = vpop.f32.mrf.mxu3  ;;  %909 = vmatmul.bf16.gmra.mxu2 %v825_v32 }
 0x1b9   :  { %v791_v34 = vadd.f32 %v790_v20, %v762_v33 }
 0x1bb   :  { %v812_v37 = vmul.f32 0.01, %v791_v34  ;;  %vm804_vm6 = vcmp.ge.f32.partialorder %v791_v34, 0.0 }
 0x1bd   :  { %v820_v3 = vsel %vm804_vm6, %v791_v34, %v812_v37 }
 0x1c0   :  { %v792_v36 = vpop.f32.mrf.mxu3 }
 0x1c1   :  { %v793_v38 = vadd.f32 %v792_v36, %v764_v35 }
 0x1c3   :  { %v813_v40 = vmul.f32 0.01, %v793_v38  ;;  %vm805_vm7 = vcmp.ge.f32.partialorder %v793_v38, 0.0 }
 0x1c5   :  { %v821_v42 = vsel %vm805_vm7, %v793_v38, %v813_v40 }
 0x1c6   :  { %v826_v43 = vpack.c.bf16 %v821_v42, %v820_v3 }
 0x1c8   :  { %v795_v44 = vpop.f32.mrf.mxu3  ;;  %914 = vmatmul.bf16.gmra.mxu2 %v826_v43 }
 0x1c9   :  { %v796_v41 = vadd.f32 %v795_v44, %v767_v18 }
 0x1cb   :  { %v814_v49 = vmul.f32 0.01, %v796_v41  ;;  %vm806_vm8 = vcmp.ge.f32.partialorder %v796_v41, 0.0 }
 0x1cd   :  { %v822_v55 = vsel %vm806_vm8, %v796_v41, %v814_v49 }
 0x1d0   :  { %v797_v48 = vpop.f32.mrf.mxu3 }
 0x1d1   :  { %v798_v52 = vadd.f32 %v797_v48, %v769_v47 }
 0x1d3   :  { %v815_v53 = vmul.f32 0.01, %v798_v52  ;;  %vm807_vm9 = vcmp.ge.f32.partialorder %v798_v52, 0.0 }
 0x1d5   :  { %v823_v57 = vsel %vm807_vm9, %v798_v52, %v815_v53 }
 0x1d6   :  { %v827_v59 = vpack.c.bf16 %v823_v57, %v822_v55 }
 0x1d8   :  { %919 = vmatmul.bf16.gmra.mxu2 %v827_v59 }
 0x22b   :  { %v905_v60 = vpop.f32.mrf.mxu2 }
 0x22c   :  { %v906_v61 = vadd.f32 %v1366_v51, %v905_v60 }
 0x22e   :  { %vm925_vm10 = vcmp.ge.f32.partialorder %v906_v61, 0.0  ;;  %v933_v62 = vmul.f32 0.01, %v906_v61 }
 0x230   :  { %v941_v45 = vsel %vm925_vm10, %v906_v61, %v933_v62 }
 0x231   :  { %950 = vst.msk [vmem:[#allocation5] sm:$0xff] %vm949_vm11, %v941_v45 }
 0x233   :  { %v907_v63 = vpop.f32.mrf.mxu2 }
 0x234   :  { %v908_v30 = vadd.f32 %v1366_v51, %v907_v63 }
 0x236   :  { %vm926_vm12 = vcmp.ge.f32.partialorder %v908_v30, 0.0  ;;  %v934_v0 = vmul.f32 0.01, %v908_v30 }
 0x238   :  { %v942_v1 = vsel %vm926_vm12, %v908_v30, %v934_v0 }
 0x239   :  { %951 = vst.msk [vmem:[#allocation5 + $0x8] sm:$0xff] %vm949_vm11, %v942_v1 }
 0x23b   :  { %v910_v6 = vpop.f32.mrf.mxu2 }
 0x23c   :  { %v911_v7 = vadd.f32 %v1366_v51, %v910_v6 }
 0x23e   :  { %vm927_vm13 = vcmp.ge.f32.partialorder %v911_v7, 0.0  ;;  %v935_v8 = vmul.f32 0.01, %v911_v7 }
 0x240   :  { %v943_v9 = vsel %vm927_vm13, %v911_v7, %v935_v8 }
 0x241   :  { %952 = vst.msk [vmem:[#allocation5 + $0x10] sm:$0xff] %vm949_vm11, %v943_v9 }
 0x243   :  { %v912_v10 = vpop.f32.mrf.mxu2 }
 0x244   :  { %v913_v54 = vadd.f32 %v1366_v51, %v912_v10 }
 0x246   :  { %vm928_vm14 = vcmp.ge.f32.partialorder %v913_v54, 0.0  ;;  %v936_v11 = vmul.f32 0.01, %v913_v54 }
 0x248   :  { %v944_v12 = vsel %vm928_vm14, %v913_v54, %v936_v11 }
 0x249   :  { %953 = vst.msk [vmem:[#allocation5 + $0x18] sm:$0xff] %vm949_vm11, %v944_v12 }
 0x24b   :  { %v915_v13 = vpop.f32.mrf.mxu2 }
 0x24c   :  { %v916_v14 = vadd.f32 %v1366_v51, %v915_v13 }
 0x24e   :  { %vm929_vm15 = vcmp.ge.f32.partialorder %v916_v14, 0.0  ;;  %v937_v15 = vmul.f32 0.01, %v916_v14 }
 0x250   :  { %v945_v50 = vsel %vm929_vm15, %v916_v14, %v937_v15 }
 0x251   :  { %954 = vst.msk [vmem:[#allocation5 + $0x20] sm:$0xff] %vm949_vm11, %v945_v50 }
 0x253   :  { %v917_v56 = vpop.f32.mrf.mxu2 }
 0x254   :  { %v918_v16 = vadd.f32 %v1366_v51, %v917_v56 }
 0x256   :  { %vm930_vm0 = vcmp.ge.f32.partialorder %v918_v16, 0.0  ;;  %v938_v17 = vmul.f32 0.01, %v918_v16 }
 0x258   :  { %v946_v21 = vsel %vm930_vm0, %v918_v16, %v938_v17 }
 0x259   :  { %955 = vst.msk [vmem:[#allocation5 + $0x28] sm:$0xff] %vm949_vm11, %v946_v21 }
 0x25b   :  { %v920_v22 = vpop.f32.mrf.mxu2 }
 0x25c   :  { %v921_v23 = vadd.f32 %v1366_v51, %v920_v22 }
 0x25e   :  { %vm931_vm1 = vcmp.ge.f32.partialorder %v921_v23, 0.0  ;;  %v939_v24 = vmul.f32 0.01, %v921_v23 }
 0x260   :  { %v947_v25 = vsel %vm931_vm1, %v921_v23, %v939_v24 }
 0x261   :  { %956 = vst.msk [vmem:[#allocation5 + $0x30] sm:$0xff] %vm949_vm11, %v947_v25 }
 0x263   :  { %v922_v26 = vpop.f32.mrf.mxu2 }
 0x264   :  { %v923_v4 = vadd.f32 %v1366_v51, %v922_v26 }
 0x266   :  { %vm932_vm2 = vcmp.ge.f32.partialorder %v923_v4, 0.0  ;;  %v940_v2 = vmul.f32 0.01, %v923_v4 }
 0x268   :  { %v948_v5 = vsel %vm932_vm2, %v923_v4, %v940_v2 }
 0x269   :  { %957 = vst.msk [vmem:[#allocation5 + $0x38] sm:$0xff] %vm949_vm11, %v948_v5 }
 0x26a   :  { %970 = dma.vmem_to_hbm [thread:$0]  %s963_s11, 1024, %s965_s3, [#allocation4], %s1423_s1, %s1423_s1, %s1424_s14  }
 0x26b   :  { %1417 = dma.done.wait [#allocation4], 1024  }
 0x26c   :  { %1418 = vsyncadd [#allocation4], 4294966272 }
 0x26d   :  { %975 = vsyncpa [#allocation3], 1 }
 0x26e   :  { %976 = vsyncpa [#allocation4], 1 }

// kernel: _cfe_pallas.1
= control target key start
LH: loop header
LB: loop body
LE: loop exit
PB: predicated region body
PF: predicated region fallthrough
CT: control target
= control target key end

     0   :  { %12 = vsyncpa [#allocation3], 0  ;;  %s1905_s0 = inlined_call_operand.vmem [shape: bf16[64,310], index: 0, kind: input, shape index: {}]   ;;  %s1906_s1 = inlined_call_operand.vmem [shape: bf16[310,256], index: 1, kind: input, shape index: {}]   ;;  %s1907_s2 = inlined_call_operand.vmem [shape: f32[1,256], index: 2, kind: input, shape index: {}]   ;;  %s1908_s3 = inlined_call_operand.hbm [shape: bf16[256,128], index: 3, kind: input, shape index: {}]   ;;  %s1909_s4 = inlined_call_operand.vmem [shape: f32[1,128], index: 4, kind: input, shape index: {}]   ;;  %s1910_s5 = inlined_call_operand.vmem [shape: bf16[128,64], index: 5, kind: input, shape index: {}]   ;;  %s1911_s6 = inlined_call_operand.vmem [shape: f32[1,64], index: 6, kind: input, shape index: {}]   ;;  %s1912_s7 = inlined_call_operand.hbm [shape: f32[64,64], index: 7, kind: output, shape index: {}]  }
   0x1   :  { %13 = vsyncpa [#allocation4], 0  ;;  %s24_s26 = sshll.u32 %s1908_s3, 4  ;;  %s1419_s27 = smov [#allocation2]   ;;  %s25_s26 = int_to_ptr.hbm [resolvable:$true] %s24_s26 }
   0x2   :  { %s26_s28 = sshll.u32 %s1419_s27, 4  ;;  %s1420_s29 = smov 64   ;;  %s27_s28 = int_to_ptr.vmem [resolvable:$true] %s26_s28 }
   0x3   :  { %s1421_s30 = smov 4  }
   0x4   :  { %32 = dma.hbm_to_vmem [thread:$0]  %s25_s26, 2048, %s27_s28, [#allocation3], %s1420_s29, %s1420_s29, %s1421_s30  }
   0x5   :  { %1415 = dma.done.wait [#allocation3], 2048  }
   0x6   :  { %1416 = vsyncadd [#allocation3], 4294965248  ;;  %v1083_v0 = vld [vmem:[%s1906_s1 + $0x70] sm:$0xf]  ;;  %v1308_v1 = vld [vmem:[%s1906_s1 + $0x74] sm:$0xf0] }
   0x7   :  { %v1147_v2 = vld [vmem:[%s1906_s1 + $0xf0] sm:$0xf]  ;;  %v1084_v3 = vor.u32 %v1308_v1, %v1083_v0  ;;  %v1324_v4 = vld [vmem:[%s1906_s1 + $0xf4] sm:$0xf0]  ;;  %v1075_v5 = vld [vmem:[%s1906_s1 + $0x60] sm:$0xf] }
   0x8   :  { %v1306_v6 = vld [vmem:[%s1906_s1 + $0x64] sm:$0xf0]  ;;  %v1148_v7 = vor.u32 %v1324_v4, %v1147_v2  ;;  %v1139_v8 = vld [vmem:[%s1906_s1 + $0xe0] sm:$0xf]  ;;  %v1067_v12 = vld [vmem:[%s1906_s1 + $0x50] sm:$0xf] }
   0x9   :  { %v1322_v9 = vld [vmem:[%s1906_s1 + $0xe4] sm:$0xf0]  ;;  %380 = vmatpush.bf16.msra.mxu0 %v1084_v3  ;;  %v1076_v10 = vor.u32 %v1306_v6, %v1075_v5  ;;  %v1304_v13 = vld [vmem:[%s1906_s1 + $0x54] sm:$0xf0]  ;;  %v1131_v14 = vld [vmem:[%s1906_s1 + $0xd0] sm:$0xf] }
   0xa   :  { %409 = vmatpush.bf16.msra.mxu1 %v1148_v7  ;;  %v1140_v11 = vor.u32 %v1322_v9, %v1139_v8  ;;  %v1320_v15 = vld [vmem:[%s1906_s1 + $0xd4] sm:$0xf0]  ;;  %v1068_v16 = vor.u32 %v1304_v13, %v1067_v12  ;;  %v1059_v18 = vld [vmem:[%s1906_s1 + $0x40] sm:$0xf]  ;;  %v1302_v19 = vld [vmem:[%s1906_s1 + $0x44] sm:$0xf0] }
   0xb   :  { %v1132_v17 = vor.u32 %v1320_v15, %v1131_v14  ;;  %v1123_v20 = vld [vmem:[%s1906_s1 + $0xc0] sm:$0xf]  ;;  %v1318_v21 = vld [vmem:[%s1906_s1 + $0xc4] sm:$0xf0]  ;;  %v1060_v22 = vor.u32 %v1302_v19, %v1059_v18  ;;  %v1051_v23 = vld [vmem:[%s1906_s1 + $0x30] sm:$0xf] }
   0xc   :  { %v1522_v24 = vld [vmem:[%s1906_s1 + $0x130] sm:$0x77]  ;;  %v1124_v25 = vor.u32 %v1318_v21, %v1123_v20  ;;  %v1300_v26 = vld [vmem:[%s1906_s1 + $0x34] sm:$0xf0]  ;;  %vm373_vm0 = vcmask 1042432   ;;  %vm360_vm1 = vcmask 441344  }
   0xd   :  { %381 = vmatpush.bf16.msra.mxu0 %v1076_v10  ;;  %v1115_v27 = vld [vmem:[%s1906_s1 + $0xb0] sm:$0xf]  ;;  %v1316_v28 = vld [vmem:[%s1906_s1 + $0xb4] sm:$0xf0]  ;;  %v280_v29 = vunpack.c.l.b16 %v1522_v24  ;;  %v1052_v31 = vor.u32 %v1300_v26, %v1051_v23  ;;  %v1043_v33 = vld [vmem:[%s1906_s1 + $0x20] sm:$0xf]  ;;  %v281_v6 = vunpack.c.h.b16 %v1522_v24 }
   0xe   :  { %410 = vmatpush.bf16.msra.mxu1 %v1140_v11  ;;  %v1116_v32 = vor.u32 %v1316_v28, %v1115_v27  ;;  %v1298_v34 = vld [vmem:[%s1906_s1 + $0x24] sm:$0xf0]  ;;  %v1107_v36 = vld [vmem:[%s1906_s1 + $0xa0] sm:$0xf]  ;;  %v1163_v42 = vld [vmem:[%s1906_s1 + $0x110] sm:$0xf] }
   0xf   :  { %v320_v30 = vpack.c.b16 %v280_v29, %v280_v29  ;;  %v1314_v37 = vld [vmem:[%s1906_s1 + $0xa4] sm:$0xf0]  ;;  %v1171_v38 = vld [vmem:[%s1906_s1 + $0x120] sm:$0xf]  ;;  %v1044_v40 = vor.u32 %v1298_v34, %v1043_v33  ;;  %v1328_v43 = vld [vmem:[%s1906_s1 + $0x114] sm:$0xf0]  ;;  %v321_v10 = vpack.c.b16 %v281_v6, %v281_v6 }
  0x10   :  { %v1330_v39 = vld [vmem:[%s1906_s1 + $0x124] sm:$0xf0]  ;;  %v1108_v44 = vor.u32 %v1314_v37, %v1107_v36  ;;  %v1035_v45 = vld [vmem:[%s1906_s1 + $0x10] sm:$0xf]  ;;  %v1296_v46 = vld [vmem:[%s1906_s1 + $0x14] sm:$0xf0]  ;;  %v1164_v49 = vor.u32 %v1328_v43, %v1163_v42 }
  0x11   :  { %382 = vmatpush.bf16.msra.mxu0 %v1068_v16  ;;  %v375_v35 = vsel %vm373_vm0, %v320_v30, 0  ;;  %v1172_v41 = vor.u32 %v1330_v39, %v1171_v38  ;;  %v1099_v47 = vld [vmem:[%s1906_s1 + $0x90] sm:$0xf]  ;;  %v1312_v48 = vld [vmem:[%s1906_s1 + $0x94] sm:$0xf0]  ;;  %v1036_v52 = vor.u32 %v1296_v46, %v1035_v45  ;;  %v378_v11 = vsel %vm373_vm0, %v321_v10, 0 }
  0x12   :  { %411 = vmatpush.bf16.msra.mxu1 %v1132_v17  ;;  %1355 = vmatpush.bf16.msra.mxu2 %v375_v35  ;;  %v1155_v50 = vld [vmem:[%s1906_s1 + $0x100] sm:$0xf]  ;;  %v1326_v51 = vld [vmem:[%s1906_s1 + $0x104] sm:$0xf0]  ;;  %v1100_v53 = vor.u32 %v1312_v48, %v1099_v47  ;;  %v1011_v59 = vld [vmem:[%s1905_s0 + $0x38] sm:$0xf] }
  0x13   :  { %v1027_v54 = vld [vmem:[%s1906_s1] sm:$0xf]  ;;  %v1294_v55 = vld [vmem:[%s1906_s1 + $0x4] sm:$0xf0]  ;;  %v1156_v58 = vor.u32 %v1326_v51, %v1155_v50  ;;  %v1289_v60 = vld [vmem:[%s1905_s0 + $0x40] sm:$0xf0] }
  0x14   :  { %v1091_v56 = vld [vmem:[%s1906_s1 + $0x80] sm:$0xf]  ;;  %v1310_v57 = vld [vmem:[%s1906_s1 + $0x84] sm:$0xf0]  ;;  %v1028_v61 = vor.u32 %v1294_v55, %v1027_v54  ;;  %v1282_v63 = vld [vmem:[%s1905_s0 + $0x8] sm:$0xf0]  ;;  %v1607_v3 = vor.u32 %v1289_v60, %v1011_v59 }
  0x15   :  { %383 = vmatpush.bf16.msra.mxu0 %v1060_v22  ;;  %v979_v62 = vld [vmem:[%s1905_s0] sm:$0xf]  ;;  %v1092_v0 = vor.u32 %v1310_v57, %v1091_v56  ;;  %v1281_v1 = vld [vmem:[%s1905_s0 + $0x4] sm:$0xf]  ;;  %v981_v2 = vld [vmem:[%s1905_s0 + $0xc] sm:$0xf0] }
  0x16   :  { %412 = vmatpush.bf16.msra.mxu1 %v1124_v25  ;;  %1356 = vmatpush.bf16.msra.mxu2 %v1172_v41  ;;  %v1609_v4 = vor.u32 %v1282_v63, %v979_v62  ;;  %v1611_v5 = vor.u32 %v1281_v1, %v981_v2  ;;  %v1307_v7 = vld [vmem:[%s1906_s1 + $0x74] sm:$0xf]  ;;  %v1085_v8 = vld [vmem:[%s1906_s1 + $0x78] sm:$0xf0]  ;;  %v1023_v12 = vld [vmem:[%s1905_s0 + $0x50] sm:$0xf] }
  0x17   :  { %v1088_v9 = vor.u32 %v1307_v7, %v1085_v8  ;;  %v1292_v13 = vld [vmem:[%s1905_s0 + $0x58] sm:$0xf0]  ;;  %v991_v14 = vld [vmem:[%s1905_s0 + $0x18] sm:$0xf]  ;;  %v1285_v15 = vld [vmem:[%s1905_s0 + $0x20] sm:$0xf0] }
  0x18   :  { %v1284_v16 = vld [vmem:[%s1905_s0 + $0x1c] sm:$0xf]  ;;  %v993_v17 = vld [vmem:[%s1905_s0 + $0x24] sm:$0xf0]  ;;  %v1643_v18 = vor.u32 %v1292_v13, %v1023_v12  ;;  %v1645_v19 = vor.u32 %v1285_v15, %v991_v14  ;;  %v1323_v21 = vld [vmem:[%s1906_s1 + $0xf4] sm:$0xf] }
  0x19   :  { %384 = vmatpush.bf16.msra.mxu0 %v1052_v31  ;;  %467 = vmatpush.bf16.msra.mxu3 %v1088_v9  ;;  %v1647_v20 = vor.u32 %v1284_v16, %v993_v17  ;;  %v1149_v22 = vld [vmem:[%s1906_s1 + $0xf8] sm:$0xf0]  ;;  %v1305_v24 = vld [vmem:[%s1906_s1 + $0x64] sm:$0xf]  ;;  %v1077_v25 = vld [vmem:[%s1906_s1 + $0x68] sm:$0xf0] }
  0x1a   :  { %413 = vmatpush.bf16.msra.mxu1 %v1116_v32  ;;  %1357 = vmatpush.bf16.msra.mxu2 %v1164_v49  ;;  %v1152_v23 = vor.u32 %v1323_v21, %v1149_v22  ;;  %v1080_v26 = vor.u32 %v1305_v24, %v1077_v25  ;;  %v1321_v27 = vld [vmem:[%s1906_s1 + $0xe4] sm:$0xf]  ;;  %v1141_v28 = vld [vmem:[%s1906_s1 + $0xe8] sm:$0xf0]  ;;  %v1303_v29 = vld [vmem:[%s1906_s1 + $0x54] sm:$0xf] }
  0x1b   :  { %v1144_v30 = vor.u32 %v1321_v27, %v1141_v28  ;;  %v1069_v31 = vld [vmem:[%s1906_s1 + $0x58] sm:$0xf0]  ;;  %v1319_v32 = vld [vmem:[%s1906_s1 + $0xd4] sm:$0xf]  ;;  %v1061_v36 = vld [vmem:[%s1906_s1 + $0x48] sm:$0xf0] }
  0x1c   :  { %v1133_v33 = vld [vmem:[%s1906_s1 + $0xd8] sm:$0xf0]  ;;  %v1072_v34 = vor.u32 %v1303_v29, %v1069_v31  ;;  %v1317_v38 = vld [vmem:[%s1906_s1 + $0xc4] sm:$0xf]  ;;  %v1125_v39 = vld [vmem:[%s1906_s1 + $0xc8] sm:$0xf0] }
  0x1d   :  { %385 = vmatpush.bf16.msra.mxu0 %v1044_v40  ;;  %468 = vmatpush.bf16.msra.mxu3 %v1080_v26  ;;  %v1136_v37 = vor.u32 %v1319_v32, %v1133_v33  ;;  %v1053_v42 = vld [vmem:[%s1906_s1 + $0x38] sm:$0xf0]  ;;  %v1003_v43 = vld [vmem:[%s1905_s0 + $0x30] sm:$0xf]  ;;  %v1128_v45 = vor.u32 %v1317_v38, %v1125_v39  ;;  %v1287_v46 = vld [vmem:[%s1905_s0 + $0x34] sm:$0xf] }
  0x1e   :  { %414 = vmatpush.bf16.msra.mxu1 %v1108_v44  ;;  %1358 = vmatpush.bf16.msra.mxu2 %v1156_v58  ;;  %v1288_v44 = vld [vmem:[%s1905_s0 + $0x38] sm:$0xf0]  ;;  %v1005_v47 = vld [vmem:[%s1905_s0 + $0x3c] sm:$0xf0]  ;;  %v1315_v51 = vld [vmem:[%s1906_s1 + $0xb4] sm:$0xf] }
  0x1f   :  { %v1715_v50 = vor.u32 %v1287_v46, %v1005_v47  ;;  %v1297_v54 = vld [vmem:[%s1906_s1 + $0x24] sm:$0xf]  ;;  %v1045_v55 = vld [vmem:[%s1906_s1 + $0x28] sm:$0xf0]  ;;  %v1295_v59 = vld [vmem:[%s1906_s1 + $0x14] sm:$0xf] }
  0x20   :  { %v1313_v56 = vld [vmem:[%s1906_s1 + $0xa4] sm:$0xf]  ;;  %v1048_v57 = vor.u32 %v1297_v54, %v1045_v55  ;;  %v1037_v60 = vld [vmem:[%s1906_s1 + $0x18] sm:$0xf0]  ;;  %v1173_v63 = vld [vmem:[%s1906_s1 + $0x128] sm:$0xf0] }
  0x21   :  { %386 = vmatpush.bf16.msra.mxu0 %v1036_v52  ;;  %1179 = vmatmul.msk.bf16.vlgmr.msra.gmra.mxu2 %vm360_vm1, %v1607_v3  ;;  %v1117_v52 = vld [vmem:[%s1906_s1 + $0xb8] sm:$0xf0]  ;;  %v1329_v62 = vld [vmem:[%s1906_s1 + $0x124] sm:$0xf]  ;;  %v1040_v1 = vor.u32 %v1295_v59, %v1037_v60  ;;  %v1029_v8 = vld [vmem:[%s1906_s1 + $0x8] sm:$0xf0] }
  0x22   :  { %415 = vmatpush.bf16.msra.mxu1 %v1100_v53  ;;  %496 = vmatpush.bf16.msrb.mxu2 %v1152_v23  ;;  %v1120_v53 = vor.u32 %v1315_v51, %v1117_v52  ;;  %v1176_v2 = vor.u32 %v1329_v62, %v1173_v63  ;;  %v1101_v6 = vld [vmem:[%s1906_s1 + $0x98] sm:$0xf0]  ;;  %v1293_v7 = vld [vmem:[%s1906_s1 + $0x4] sm:$0xf]  ;;  %v1015_v13 = vld [vmem:[%s1905_s0 + $0x48] sm:$0xf] }
  0x23   :  { %469 = vmatpush.bf16.msra.mxu3 %v1072_v34  ;;  %v1309_v10 = vld [vmem:[%s1906_s1 + $0x84] sm:$0xf]  ;;  %v1032_v12 = vor.u32 %v1293_v7, %v1029_v8  ;;  %v1291_v14 = vld [vmem:[%s1905_s0 + $0x50] sm:$0xf0]  ;;  %v1290_v16 = vld [vmem:[%s1905_s0 + $0x4c] sm:$0xf] }
  0x24   :  { %v1017_v17 = vld [vmem:[%s1905_s0 + $0x54] sm:$0xf0]  ;;  %v1016_v21 = vor.u32 %v1291_v14, %v1015_v13  ;;  %v1327_v23 = vld [vmem:[%s1906_s1 + $0x114] sm:$0xf]  ;;  %v1165_v24 = vld [vmem:[%s1906_s1 + $0x118] sm:$0xf0] }
  0x25   :  { %387 = vmatpush.bf16.msra.mxu0 %v1028_v61  ;;  %v1020_v22 = vor.u32 %v1290_v16, %v1017_v17  ;;  %v1325_v25 = vld [vmem:[%s1906_s1 + $0x104] sm:$0xf]  ;;  %v1168_v26 = vor.u32 %v1327_v23, %v1165_v24  ;;  %v987_v27 = vld [vmem:[%s1905_s0 + $0x8] sm:$0xf]  ;;  %v1283_v28 = vld [vmem:[%s1905_s0 + $0x10] sm:$0xf0] }
  0x26   :  { %416 = vmatpush.bf16.msra.mxu1 %v1092_v0  ;;  %497 = vmatpush.bf16.msrb.mxu2 %v1144_v30  ;;  %v1311_v0 = vld [vmem:[%s1906_s1 + $0x94] sm:$0xf]  ;;  %v988_v29 = vor.u32 %v1283_v28, %v987_v27  ;;  %v999_v30 = vld [vmem:[%s1905_s0 + $0x20] sm:$0xf]  ;;  %v1286_v31 = vld [vmem:[%s1905_s0 + $0x28] sm:$0xf0] }
  0x27   :  { %v1104_v9 = vor.u32 %v1311_v0, %v1101_v6  ;;  %v1000_v32 = vor.u32 %v1286_v31, %v999_v30  ;;  %v1338_v33 = vld [vmem:[#allocation2 + $0x38] sm:$0xff]  ;;  %v1345_v39 = vld [vmem:[#allocation2 + $0x70] sm:$0xff]  ;;  %v1343_v47 = vld [vmem:[#allocation2 + $0x60] sm:$0xff]  ;;  %s964_s3 = sshll.u32 %s1912_s7, 4  ;;  %s1424_s14 = smov 8   ;;  %s965_s3 = int_to_ptr.hbm [resolvable:$true] %s964_s3 }
  0x28   :  { %388 = vmatmul.bf16.vlgmr.msra.gmra.mxu0 %v1609_v4  ;;  %v1342_v52 = vld [vmem:[#allocation2 + $0x58] sm:$0xff]  ;;  %v1340_v0 = vld [vmem:[#allocation2 + $0x48] sm:$0xff] }
  0x29   :  { %442 = vmatpush.bf16.msrb.mxu0 %v375_v35  ;;  %417 = vmatmul.bf16.vlgmr.msra.gmra.mxu1 %v1611_v5  ;;  %v1301_v35 = vld [vmem:[%s1906_s1 + $0x44] sm:$0xf] }
  0x2a   :  { %v1064_v40 = vor.u32 %v1301_v35, %v1061_v36  ;;  %498 = vmatpush.bf16.msrb.mxu2 %v1136_v37  ;;  %v1346_v35 = vld [vmem:[#allocation2 + $0x78] sm:$0xff]  ;;  %742 = vmatpush.bf16.msrb.mxu1 %v1338_v33  ;;  %v1337_v36 = vld [vmem:[#allocation2 + $0x30] sm:$0xff]  ;;  %v1336_v37 = vld [vmem:[#allocation2 + $0x28] sm:$0xff] }
  0x2c   :  { %470 = vmatpush.bf16.msra.mxu3 %v1064_v40  ;;  %v1335_v40 = vld [vmem:[#allocation2 + $0x20] sm:$0xff] }
  0x2d   :  { %443 = vmatpush.bf16.msrb.mxu0 %v1172_v41  ;;  %v1299_v41 = vld [vmem:[%s1906_s1 + $0x34] sm:$0xf] }
  0x2e   :  { %v1056_v48 = vor.u32 %v1299_v41, %v1053_v42  ;;  %499 = vmatpush.bf16.msrb.mxu2 %v1128_v45  ;;  %743 = vmatpush.bf16.msrb.mxu1 %v1337_v36  ;;  %v1344_v42 = vld [vmem:[#allocation2 + $0x68] sm:$0xff] }
  0x30   :  { %471 = vmatpush.bf16.msra.mxu3 %v1056_v48  ;;  %v1331_v48 = vld [vmem:[#allocation2] sm:$0xff] }
  0x31   :  { %444 = vmatpush.bf16.msrb.mxu0 %v1164_v49  ;;  %1180 = vmatmul.msk.bf16.gmra.mxu2 %vm360_vm1, %v1643_v18  ;;  %v1713_v49 = vor.u32 %v1288_v44, %v1003_v43  ;;  %v1333_v43 = vld [vmem:[#allocation2 + $0x10] sm:$0xff] }
  0x32   :  { %500 = vmatpush.bf16.msrb.mxu2 %v1120_v53  ;;  %744 = vmatpush.bf16.msrb.mxu1 %v1336_v37  ;;  %v99_v53 = vld [vmem:[%s1907_s2] sm:$0x3] }
  0x33   :  { %v1843_v30 = vperm.slane %v99_v53, 1 }
  0x34   :  { %472 = vmatpush.bf16.msra.mxu3 %v1048_v57  ;;  %v1341_v57 = vld [vmem:[#allocation2 + $0x50] sm:$0xff] }
  0x35   :  { %445 = vmatpush.bf16.msrb.mxu0 %v1156_v58  ;;  %v1109_v58 = vld [vmem:[%s1906_s1 + $0xa8] sm:$0xf0] }
  0x36   :  { %v1112_v61 = vor.u32 %v1313_v56, %v1109_v58  ;;  %745 = vmatpush.bf16.msrb.mxu1 %v1335_v40  ;;  %v1832_v56 = vperm.slane %v99_v53, 0 }
  0x38   :  { %393 = vmatmul.bf16.gmra.mxu0 %v1645_v19  ;;  %501 = vmatpush.bf16.msrb.mxu2 %v1112_v61 }
  0x39   :  { %529 = vmatpush.bf16.msra.mxu0 %v378_v11  ;;  %422 = vmatmul.bf16.gmra.mxu1 %v1647_v20  ;;  %v1093_v11 = vld [vmem:[%s1906_s1 + $0x88] sm:$0xf0] }
  0x3a   :  { %473 = vmatpush.bf16.msra.mxu3 %v1040_v1  ;;  %v1096_v15 = vor.u32 %v1309_v10, %v1093_v11 }
  0x3c   :  { %502 = vmatpush.bf16.msrb.mxu2 %v1104_v9 }
  0x3d   :  { %530 = vmatpush.bf16.msra.mxu0 %v1176_v2 }
  0x3e   :  { %474 = vmatpush.bf16.msra.mxu3 %v1032_v12  ;;  %v1339_v12 = vld [vmem:[#allocation2 + $0x40] sm:$0xff] }
  0x40   :  { %503 = vmatpush.bf16.msrb.mxu2 %v1096_v15 }
  0x41   :  { %475 = vmatmul.bf16.vlgmr.msra.gmra.mxu3 %v1609_v4  ;;  %v1157_v4 = vld [vmem:[%s1906_s1 + $0x108] sm:$0xf0]  ;;  %531 = vmatpush.bf16.msra.mxu0 %v1168_v26  ;;  %s1423_s1 = smov 128  }
  0x42   :  { %771 = vmatpush.bf16.msrb.mxu3 %v1346_v35 }
  0x43   :  { %504 = vmatmul.bf16.vlgmr.msrb.gmra.mxu2 %v1611_v5  ;;  %v1160_v5 = vor.u32 %v1325_v25, %v1157_v4 }
  0x45   :  { %532 = vmatpush.bf16.msra.mxu0 %v1160_v5 }
  0x46   :  { %772 = vmatpush.bf16.msrb.mxu3 %v1345_v39 }
  0x48   :  { %398 = vmatmul.bf16.gmra.mxu0 %v1713_v49 }
  0x49   :  { %427 = vmatmul.bf16.gmra.mxu1 %v1715_v50 }
  0x4a   :  { %773 = vmatpush.bf16.msrb.mxu3 %v1344_v42 }
  0x4e   :  { %774 = vmatpush.bf16.msrb.mxu3 %v1343_v47 }
  0x51   :  { %480 = vmatmul.bf16.gmra.mxu3 %v1645_v19 }
  0x52   :  { %775 = vmatpush.bf16.msrb.mxu3 %v1342_v52 }
  0x53   :  { %509 = vmatmul.bf16.gmra.mxu2 %v1647_v20 }
  0x56   :  { %776 = vmatpush.bf16.msrb.mxu3 %v1341_v57 }
  0x58   :  { %403 = vmatmul.bf16.gmra.mxu0 %v1016_v21 }
  0x59   :  { %432 = vmatmul.bf16.gmra.mxu1 %v1020_v22 }
  0x5a   :  { %777 = vmatpush.bf16.msrb.mxu3 %v1340_v0 }
  0x5e   :  { %778 = vmatpush.bf16.msrb.mxu3 %v1339_v12 }
  0x61   :  { %485 = vmatmul.bf16.gmra.mxu3 %v1713_v49 }
  0x63   :  { %514 = vmatmul.bf16.gmra.mxu2 %v1715_v50 }
  0x68   :  { %1177 = vmatmul.msk.bf16.vlgmr.msrb.gmra.mxu0 %vm360_vm1, %v988_v29 }
  0x71   :  { %490 = vmatmul.bf16.gmra.mxu3 %v1016_v21 }
  0x73   :  { %519 = vmatmul.bf16.gmra.mxu2 %v1020_v22 }
  0x78   :  { %1178 = vmatmul.msk.bf16.gmra.mxu0 %vm360_vm1, %v1000_v32 }
  0x88   :  { %1181 = vmatmul.msk.bf16.vlgmr.msra.gmra.mxu0 %vm360_vm1, %v988_v29 }
  0x98   :  { %1182 = vmatmul.msk.bf16.gmra.mxu0 %vm360_vm1, %v1000_v32 }
  0xa4   :  { %v1821_v45 = vpop.f32.mrf.mxu2 }
  0xa5   :  { %v389_v19 = vpop.f32.mrf.mxu0 }
  0xa6   :  { %v418_v44 = vpop.f32.mrf.mxu1  ;;  %v390_v59 = vadd.f32 %v389_v19, %v1832_v56 }
  0xa8   :  { %1183 = vmatmul.msk.bf16.gmra.mxu0 %vm360_vm1, %v1607_v3  ;;  %v1334_v3 = vld [vmem:[#allocation2 + $0x18] sm:$0xff]  ;;  %v419_v61 = vadd.f32 %v418_v44, %v390_v59 }
  0xa9   :  { %746 = vmatpush.bf16.msrb.mxu1 %v1334_v3 }
  0xac   :  { %v1825_v51 = vpop.f32.mrf.mxu2 }
  0xad   :  { %v391_v20 = vpop.f32.mrf.mxu0  ;;  %747 = vmatpush.bf16.msrb.mxu1 %v1333_v43 }
  0xae   :  { %v420_v49 = vpop.f32.mrf.mxu1  ;;  %v392_v62 = vadd.f32 %v391_v20, %v1832_v56 }
  0xb0   :  { %v421_v6 = vadd.f32 %v420_v49, %v392_v62 }
  0xb4   :  { %v1834_v58 = vpop.f32.mrf.mxu2 }
  0xb5   :  { %v1815_v34 = vpop.f32.mrf.mxu0 }
  0xb6   :  { %v423_v55 = vpop.f32.mrf.mxu1  ;;  %v395_v21 = vadd.f32 %v1815_v34, %v1832_v56 }
  0xb8   :  { %1184 = vmatmul.msk.bf16.gmra.mxu0 %vm360_vm1, %v1643_v18  ;;  %v1332_v18 = vld [vmem:[#allocation2 + $0x8] sm:$0xff]  ;;  %v424_v23 = vadd.f32 %v423_v55, %v395_v21 }
  0xb9   :  { %748 = vmatpush.bf16.msrb.mxu1 %v1332_v18 }
  0xbc   :  { %v1838_v2 = vpop.f32.mrf.mxu2 }
  0xbd   :  { %v396_v38 = vpop.f32.mrf.mxu0  ;;  %749 = vmatpush.bf16.msrb.mxu1 %v1331_v48 }
  0xbe   :  { %v425_v63 = vpop.f32.mrf.mxu1  ;;  %v397_v24 = vadd.f32 %v396_v38, %v1832_v56 }
  0xc0   :  { %v426_v4 = vadd.f32 %v425_v63, %v397_v24 }
  0xc4   :  { %v476_v10 = vpop.f32.mrf.mxu3 }
  0xc5   :  { %v1819_v41 = vpop.f32.mrf.mxu0  ;;  %v477_v33 = vadd.f32 %v476_v10, %v1843_v30 }
  0xc6   :  { %v428_v13 = vpop.f32.mrf.mxu1  ;;  %v505_v17 = vpop.f32.mrf.mxu2  ;;  %v400_v20 = vadd.f32 %v1819_v41, %v1832_v56 }
  0xc7   :  { %v506_v3 = vadd.f32 %v505_v17, %v477_v33  ;;  %v1353_v33 = vld [vmem:[%s1910_s5 + $0x30] sm:$0xff] }
  0xc8   :  { %v429_v39 = vadd.f32 %v428_v13, %v400_v20 }
  0xcc   :  { %v478_v25 = vpop.f32.mrf.mxu3 }
  0xcd   :  { %v401_v46 = vpop.f32.mrf.mxu0  ;;  %v479_v18 = vadd.f32 %v478_v25, %v1843_v30 }
  0xce   :  { %v430_v5 = vpop.f32.mrf.mxu1  ;;  %v507_v28 = vpop.f32.mrf.mxu2  ;;  %v402_v32 = vadd.f32 %v401_v46, %v1832_v56  ;;  %v458_v46 = vadd.f32 %v1821_v45, %v429_v39 }
  0xcf   :  { %v508_v48 = vadd.f32 %v507_v28, %v479_v18 }
  0xd0   :  { %v431_v38 = vadd.f32 %v430_v5, %v402_v32  ;;  %v578_v49 = vmul.f32 0.01, %v458_v46  ;;  %vm562_vm7 = vcmp.ge.f32.partialorder %v458_v46, 0.0 }
  0xd2   :  { %v460_v44 = vadd.f32 %v1825_v51, %v431_v38  ;;  %v594_v45 = vsel %vm562_vm7, %v458_v46, %v578_v49 }
  0xd4   :  { %v481_v37 = vpop.f32.mrf.mxu3  ;;  %v580_v47 = vmul.f32 0.01, %v460_v44  ;;  %vm564_vm6 = vcmp.ge.f32.partialorder %v460_v44, 0.0 }
  0xd5   :  { %v1823_v50 = vpop.f32.mrf.mxu0  ;;  %v482_v0 = vadd.f32 %v481_v37, %v1843_v30 }
  0xd6   :  { %v433_v42 = vpop.f32.mrf.mxu1  ;;  %v510_v43 = vpop.f32.mrf.mxu2  ;;  %v405_v63 = vadd.f32 %v1823_v50, %v1832_v56 }
  0xdc   :  { %v483_v53 = vpop.f32.mrf.mxu3 }
  0xdd   :  { %v1830_v54 = vpop.f32.mrf.mxu0 }
  0xde   :  { %v407_v59 = vadd.f32 %v1830_v54, %v1832_v56  ;;  %v512_v62 = vpop.f32.mrf.mxu2  ;;  %v434_v54 = vadd.f32 %v433_v42, %v405_v63  ;;  %v1352_v63 = vld [vmem:[%s1910_s5 + $0x28] sm:$0xff] }
  0xe4   :  { %v486_v12 = vpop.f32.mrf.mxu3 }
  0xe5   :  { %v447_v60 = vpop.f32.mrf.mxu0 }
  0xe6   :  { %v448_v1 = vadd.f32 %v447_v60, %v419_v61  ;;  %v596_v60 = vsel %vm564_vm6, %v460_v44, %v580_v47  ;;  %v435_v61 = vpop.f32.mrf.mxu1  ;;  %v515_v56 = vpop.f32.mrf.mxu2 }
  0xe8   :  { %v570_v8 = vmul.f32 0.01, %v448_v1  ;;  %vm554_vm2 = vcmp.ge.f32.partialorder %v448_v1, 0.0 }
  0xea   :  { %v586_v14 = vsel %vm554_vm2, %v448_v1, %v570_v8 }
  0xed   :  { %v449_v7 = vpop.f32.mrf.mxu0 }
  0xee   :  { %v450_v9 = vadd.f32 %v449_v7, %v421_v6  ;;  %v606_v7 = vpack.c.bf16 %v596_v60, %v594_v45 }
  0xf0   :  { %vm556_vm3 = vcmp.ge.f32.partialorder %v450_v9, 0.0  ;;  %v572_v11 = vmul.f32 0.01, %v450_v9 }
  0xf2   :  { %v588_v15 = vsel %vm556_vm3, %v450_v9, %v572_v11  ;;  %v436_v9 = vadd.f32 %v435_v61, %v407_v59  ;;  %v511_v11 = vadd.f32 %v510_v43, %v482_v0  ;;  %v1350_v0 = vld [vmem:[%s1910_s5 + $0x18] sm:$0xff] }
  0xf3   :  { %v602_v16 = vpack.c.bf16 %v588_v15, %v586_v14  ;;  %v484_v14 = vadd.f32 %v483_v53, %v1843_v30  ;;  %v463_v15 = vadd.f32 %v1834_v58, %v434_v54 }
  0xf4   :  { %v465_v13 = vadd.f32 %v1838_v2, %v436_v9  ;;  %v487_v2 = vadd.f32 %v486_v12, %v1843_v30 }
  0xf5   :  { %v452_v22 = vpop.f32.mrf.mxu0  ;;  %750 = vmatmul.bf16.vlgmr.msrb.gmra.mxu1 %v602_v16  ;;  %v513_v17 = vadd.f32 %v512_v62, %v484_v14  ;;  %vm566_vm11 = vcmp.ge.f32.partialorder %v463_v15, 0.0 }
  0xf6   :  { %v453_v26 = vadd.f32 %v452_v22, %v424_v23  ;;  %v584_v16 = vmul.f32 0.01, %v465_v13  ;;  %vm568_vm10 = vcmp.ge.f32.partialorder %v465_v13, 0.0  ;;  %v582_v22 = vmul.f32 0.01, %v463_v15 }
  0xf7   :  { %v516_v20 = vadd.f32 %v515_v56, %v487_v2 }
  0xf8   :  { %v574_v29 = vmul.f32 0.01, %v453_v26  ;;  %vm558_vm4 = vcmp.ge.f32.partialorder %v453_v26, 0.0  ;;  %v598_v5 = vsel %vm566_vm11, %v463_v15, %v582_v22  ;;  %vm949_vm11 = vcmask 523264  }
  0xfa   :  { %v590_v34 = vsel %vm558_vm4, %v453_v26, %v574_v29  ;;  %v600_v26 = vsel %vm568_vm10, %v465_v13, %v584_v16 }
  0xfb   :  { %v608_v28 = vpack.c.bf16 %v600_v26, %v598_v5 }
  0xfd   :  { %v454_v27 = vpop.f32.mrf.mxu0 }
  0xfe   :  { %v455_v31 = vadd.f32 %v454_v27, %v426_v4  ;;  %v488_v4 = vpop.f32.mrf.mxu3 }
 0x100   :  { %v576_v19 = vmul.f32 0.01, %v455_v31  ;;  %vm560_vm5 = vcmp.ge.f32.partialorder %v455_v31, 0.0 }
 0x102   :  { %v592_v35 = vsel %vm560_vm5, %v455_v31, %v576_v19  ;;  %v517_v31 = vpop.f32.mrf.mxu2  ;;  %v1354_v19 = vld [vmem:[%s1910_s5 + $0x38] sm:$0xff] }
 0x103   :  { %v604_v36 = vpack.c.bf16 %v592_v35, %v590_v34  ;;  %896 = vmatpush.bf16.msra.mxu2 %v1354_v19  ;;  %v489_v34 = vadd.f32 %v488_v4, %v1843_v30 }
 0x105   :  { %v534_v40 = vpop.f32.mrf.mxu0  ;;  %755 = vmatmul.bf16.gmra.mxu1 %v604_v36  ;;  %v518_v37 = vadd.f32 %v517_v31, %v489_v34 }
 0x106   :  { %v535_v41 = vadd.f32 %v534_v40, %v506_v3  ;;  %v491_v36 = vpop.f32.mrf.mxu3 }
 0x107   :  { %897 = vmatpush.bf16.msra.mxu2 %v1353_v33  ;;  %v492_v43 = vadd.f32 %v491_v36, %v1843_v30 }
 0x108   :  { %v571_v55 = vmul.f32 0.01, %v535_v41  ;;  %vm555_vm8 = vcmp.ge.f32.partialorder %v535_v41, 0.0 }
 0x10a   :  { %v587_v1 = vsel %vm555_vm8, %v535_v41, %v571_v55  ;;  %v520_v3 = vpop.f32.mrf.mxu2 }
 0x10b   :  { %898 = vmatpush.bf16.msra.mxu2 %v1352_v63 }
 0x10d   :  { %v536_v52 = vpop.f32.mrf.mxu0 }
 0x10e   :  { %v537_v57 = vadd.f32 %v536_v52, %v508_v48  ;;  %v493_v41 = vpop.f32.mrf.mxu3  ;;  %v521_v48 = vadd.f32 %v520_v3, %v492_v43 }
 0x10f   :  { %v494_v49 = vadd.f32 %v493_v41, %v1843_v30  ;;  %v1351_v30 = vld [vmem:[%s1910_s5 + $0x20] sm:$0xff] }
 0x110   :  { %vm557_vm9 = vcmp.ge.f32.partialorder %v537_v57, 0.0  ;;  %v573_v51 = vmul.f32 0.01, %v537_v57  ;;  %899 = vmatpush.bf16.msra.mxu2 %v1351_v30 }
 0x112   :  { %v589_v6 = vsel %vm557_vm9, %v537_v57, %v573_v51  ;;  %v522_v52 = vpop.f32.mrf.mxu2 }
 0x113   :  { %v603_v8 = vpack.c.bf16 %v589_v6, %v587_v1  ;;  %v523_v55 = vadd.f32 %v522_v52, %v494_v49  ;;  %v1349_v1 = vld [vmem:[%s1910_s5 + $0x10] sm:$0xff]  ;;  %v1348_v6 = vld [vmem:[%s1910_s5 + $0x8] sm:$0xff] }
 0x114   :  { %900 = vmatpush.bf16.msra.mxu2 %v1350_v0 }
 0x115   :  { %v539_v10 = vpop.f32.mrf.mxu0  ;;  %760 = vmatmul.bf16.gmra.mxu1 %v606_v7  ;;  %779 = vmatmul.bf16.vlgmr.msrb.gmra.mxu3 %v603_v8  ;;  %v1347_v7 = vld [vmem:[%s1910_s5] sm:$0xff] }
 0x116   :  { %v540_v50 = vadd.f32 %v539_v10, %v511_v11  ;;  %v1365_v10 = vld [vmem:[%s1909_s4] ss:$0 sm:$0xff] }
 0x118   :  { %v575_v23 = vmul.f32 0.01, %v540_v50  ;;  %vm559_vm12 = vcmp.ge.f32.partialorder %v540_v50, 0.0  ;;  %901 = vmatpush.bf16.msra.mxu2 %v1349_v1 }
 0x11a   :  { %v591_v27 = vsel %vm559_vm12, %v540_v50, %v575_v23 }
 0x11c   :  { %902 = vmatpush.bf16.msra.mxu2 %v1348_v6 }
 0x11d   :  { %v541_v21 = vpop.f32.mrf.mxu0 }
 0x11e   :  { %v542_v24 = vadd.f32 %v541_v21, %v513_v17 }
 0x120   :  { %v577_v25 = vmul.f32 0.01, %v542_v24  ;;  %vm561_vm13 = vcmp.ge.f32.partialorder %v542_v24, 0.0  ;;  %903 = vmatpush.bf16.msra.mxu2 %v1347_v7 }
 0x122   :  { %v593_v58 = vsel %vm561_vm13, %v542_v24, %v577_v25 }
 0x123   :  { %v605_v29 = vpack.c.bf16 %v593_v58, %v591_v27 }
 0x125   :  { %v544_v32 = vpop.f32.mrf.mxu0  ;;  %765 = vmatmul.bf16.gmra.mxu1 %v608_v28  ;;  %784 = vmatmul.bf16.gmra.mxu3 %v605_v29 }
 0x126   :  { %v545_v35 = vadd.f32 %v544_v32, %v516_v20 }
 0x128   :  { %v579_v39 = vmul.f32 0.01, %v545_v35  ;;  %vm563_vm14 = vcmp.ge.f32.partialorder %v545_v35, 0.0 }
 0x12a   :  { %v595_v44 = vsel %vm563_vm14, %v545_v35, %v579_v39 }
 0x12d   :  { %v546_v38 = vpop.f32.mrf.mxu0 }
 0x12e   :  { %v547_v40 = vadd.f32 %v546_v38, %v518_v37 }
 0x130   :  { %v581_v42 = vmul.f32 0.01, %v547_v40  ;;  %vm565_vm15 = vcmp.ge.f32.partialorder %v547_v40, 0.0 }
 0x132   :  { %v597_v18 = vsel %vm565_vm15, %v547_v40, %v581_v42 }
 0x133   :  { %v607_v46 = vpack.c.bf16 %v597_v18, %v595_v44 }
 0x135   :  { %v549_v47 = vpop.f32.mrf.mxu0  ;;  %789 = vmatmul.bf16.gmra.mxu3 %v607_v46 }
 0x136   :  { %v550_v53 = vadd.f32 %v549_v47, %v521_v48 }
 0x138   :  { %v583_v59 = vmul.f32 0.01, %v550_v53  ;;  %vm567_vm0 = vcmp.ge.f32.partialorder %v550_v53, 0.0 }
 0x13a   :  { %v599_v61 = vsel %vm567_vm0, %v550_v53, %v583_v59 }
 0x13d   :  { %v551_v57 = vpop.f32.mrf.mxu0 }
 0x13e   :  { %v552_v51 = vadd.f32 %v551_v57, %v523_v55 }
 0x140   :  { %v585_v60 = vmul.f32 0.01, %v552_v51  ;;  %vm569_vm1 = vcmp.ge.f32.partialorder %v552_v51, 0.0 }
 0x142   :  { %v601_v62 = vsel %vm569_vm1, %v552_v51, %v585_v60  ;;  %v1366_v51 = vld [vmem:[%s1911_s6] ss:$0 sm:$0xff]  ;;  %s1422_s6 = smov [#allocation5]  }
 0x143   :  { %v609_v45 = vpack.c.bf16 %v601_v62, %v599_v61  ;;  %s962_s11 = sshll.u32 %s1422_s6, 4  ;;  %s963_s11 = int_to_ptr.vmem [resolvable:$true] %s962_s11 }
 0x145   :  { %794 = vmatmul.bf16.gmra.mxu3 %v609_v45 }
 0x172   :  { %v751_v8 = vpop.f32.mrf.mxu1 }
 0x173   :  { %v752_v12 = vadd.f32 %v1365_v10, %v751_v8 }
 0x17a   :  { %v753_v9 = vpop.f32.mrf.mxu1 }
 0x17b   :  { %v754_v14 = vadd.f32 %v1365_v10, %v753_v9 }
 0x182   :  { %v756_v11 = vpop.f32.mrf.mxu1 }
 0x183   :  { %v757_v25 = vadd.f32 %v1365_v10, %v756_v11 }
 0x18a   :  { %v758_v17 = vpop.f32.mrf.mxu1 }
 0x18b   :  { %v759_v2 = vadd.f32 %v1365_v10, %v758_v17 }
 0x192   :  { %v761_v4 = vpop.f32.mrf.mxu1 }
 0x193   :  { %v762_v33 = vadd.f32 %v1365_v10, %v761_v4 }
 0x198   :  { %v780_v54 = vpop.f32.mrf.mxu3 }
 0x199   :  { %v781_v13 = vadd.f32 %v780_v54, %v752_v12 }
 0x19a   :  { %v763_v19 = vpop.f32.mrf.mxu1 }
 0x19b   :  { %v808_v50 = vmul.f32 0.01, %v781_v13  ;;  %vm800_vm2 = vcmp.ge.f32.partialorder %v781_v13, 0.0  ;;  %v764_v35 = vadd.f32 %v1365_v10, %v763_v19 }
 0x19d   :  { %v816_v21 = vsel %vm800_vm2, %v781_v13, %v808_v50 }
 0x1a0   :  { %v782_v15 = vpop.f32.mrf.mxu3 }
 0x1a1   :  { %v783_v56 = vadd.f32 %v782_v15, %v754_v14 }
 0x1a2   :  { %v766_v39 = vpop.f32.mrf.mxu1 }
 0x1a3   :  { %vm801_vm3 = vcmp.ge.f32.partialorder %v783_v56, 0.0  ;;  %v809_v16 = vmul.f32 0.01, %v783_v56  ;;  %v767_v18 = vadd.f32 %v1365_v10, %v766_v39 }
 0x1a5   :  { %v817_v22 = vsel %vm801_vm3, %v783_v56, %v809_v16 }
 0x1a6   :  { %v824_v23 = vpack.c.bf16 %v817_v22, %v816_v21 }
 0x1a8   :  { %v785_v24 = vpop.f32.mrf.mxu3  ;;  %904 = vmatmul.bf16.vlgmr.msra.gmra.mxu2 %v824_v23 }
 0x1a9   :  { %v786_v26 = vadd.f32 %v785_v24, %v757_v25 }
 0x1aa   :  { %v768_v46 = vpop.f32.mrf.mxu1 }
 0x1ab   :  { %v810_v27 = vmul.f32 0.01, %v786_v26  ;;  %vm802_vm4 = vcmp.ge.f32.partialorder %v786_v26, 0.0  ;;  %v769_v47 = vadd.f32 %v1365_v10, %v768_v46 }
 0x1ad   :  { %v818_v29 = vsel %vm802_vm4, %v786_v26, %v810_v27 }
 0x1b0   :  { %v787_v5 = vpop.f32.mrf.mxu3 }
 0x1b1   :  { %v788_v58 = vadd.f32 %v787_v5, %v759_v2 }
 0x1b3   :  { %v811_v28 = vmul.f32 0.01, %v788_v58  ;;  %vm803_vm5 = vcmp.ge.f32.partialorder %v788_v58, 0.0 }
 0x1b5   :  { %v819_v31 = vsel %vm803_vm5, %v788_v58, %v811_v28 }
 0x1b6   :  { %v825_v32 = vpack.c.bf16 %v819_v31, %v818_v29 }
 0x1b8   :  { %v790_v20 = vpop.f32.mrf.mxu3  ;;  %909 = vmatmul.bf16.gmra.mxu2 %v825_v32 }
 0x1b9   :  { %v791_v34 = vadd.f32 %v790_v20, %v762_v33 }
 0x1bb   :  { %v812_v37 = vmul.f32 0.01, %v791_v34  ;;  %vm804_vm6 = vcmp.ge.f32.partialorder %v791_v34, 0.0 }
 0x1bd   :  { %v820_v3 = vsel %vm804_vm6, %v791_v34, %v812_v37 }
 0x1c0   :  { %v792_v36 = vpop.f32.mrf.mxu3 }
 0x1c1   :  { %v793_v38 = vadd.f32 %v792_v36, %v764_v35 }
 0x1c3   :  { %v813_v40 = vmul.f32 0.01, %v793_v38  ;;  %vm805_vm7 = vcmp.ge.f32.partialorder %v793_v38, 0.0 }
 0x1c5   :  { %v821_v42 = vsel %vm805_vm7, %v793_v38, %v813_v40 }
 0x1c6   :  { %v826_v43 = vpack.c.bf16 %v821_v42, %v820_v3 }
 0x1c8   :  { %v795_v44 = vpop.f32.mrf.mxu3  ;;  %914 = vmatmul.bf16.gmra.mxu2 %v826_v43 }
 0x1c9   :  { %v796_v41 = vadd.f32 %v795_v44, %v767_v18 }
 0x1cb   :  { %v814_v49 = vmul.f32 0.01, %v796_v41  ;;  %vm806_vm8 = vcmp.ge.f32.partialorder %v796_v41, 0.0 }
 0x1cd   :  { %v822_v55 = vsel %vm806_vm8, %v796_v41, %v814_v49 }
 0x1d0   :  { %v797_v48 = vpop.f32.mrf.mxu3 }
 0x1d1   :  { %v798_v52 = vadd.f32 %v797_v48, %v769_v47 }
 0x1d3   :  { %v815_v53 = vmul.f32 0.01, %v798_v52  ;;  %vm807_vm9 = vcmp.ge.f32.partialorder %v798_v52, 0.0 }
 0x1d5   :  { %v823_v57 = vsel %vm807_vm9, %v798_v52, %v815_v53 }
 0x1d6   :  { %v827_v59 = vpack.c.bf16 %v823_v57, %v822_v55 }
 0x1d8   :  { %919 = vmatmul.bf16.gmra.mxu2 %v827_v59 }
 0x22b   :  { %v905_v60 = vpop.f32.mrf.mxu2 }
 0x22c   :  { %v906_v61 = vadd.f32 %v1366_v51, %v905_v60 }
 0x22e   :  { %vm925_vm10 = vcmp.ge.f32.partialorder %v906_v61, 0.0  ;;  %v933_v62 = vmul.f32 0.01, %v906_v61 }
 0x230   :  { %v941_v45 = vsel %vm925_vm10, %v906_v61, %v933_v62 }
 0x231   :  { %950 = vst.msk [vmem:[#allocation5] sm:$0xff] %vm949_vm11, %v941_v45 }
 0x233   :  { %v907_v63 = vpop.f32.mrf.mxu2 }
 0x234   :  { %v908_v30 = vadd.f32 %v1366_v51, %v907_v63 }
 0x236   :  { %vm926_vm12 = vcmp.ge.f32.partialorder %v908_v30, 0.0  ;;  %v934_v0 = vmul.f32 0.01, %v908_v30 }
 0x238   :  { %v942_v1 = vsel %vm926_vm12, %v908_v30, %v934_v0 }
 0x239   :  { %951 = vst.msk [vmem:[#allocation5 + $0x8] sm:$0xff] %vm949_vm11, %v942_v1 }
 0x23b   :  { %v910_v6 = vpop.f32.mrf.mxu2 }
 0x23c   :  { %v911_v7 = vadd.f32 %v1366_v51, %v910_v6 }
 0x23e   :  { %vm927_vm13 = vcmp.ge.f32.partialorder %v911_v7, 0.0  ;;  %v935_v8 = vmul.f32 0.01, %v911_v7 }
 0x240   :  { %v943_v9 = vsel %vm927_vm13, %v911_v7, %v935_v8 }
 0x241   :  { %952 = vst.msk [vmem:[#allocation5 + $0x10] sm:$0xff] %vm949_vm11, %v943_v9 }
 0x243   :  { %v912_v10 = vpop.f32.mrf.mxu2 }
 0x244   :  { %v913_v54 = vadd.f32 %v1366_v51, %v912_v10 }
 0x246   :  { %vm928_vm14 = vcmp.ge.f32.partialorder %v913_v54, 0.0  ;;  %v936_v11 = vmul.f32 0.01, %v913_v54 }
 0x248   :  { %v944_v12 = vsel %vm928_vm14, %v913_v54, %v936_v11 }
 0x249   :  { %953 = vst.msk [vmem:[#allocation5 + $0x18] sm:$0xff] %vm949_vm11, %v944_v12 }
 0x24b   :  { %v915_v13 = vpop.f32.mrf.mxu2 }
 0x24c   :  { %v916_v14 = vadd.f32 %v1366_v51, %v915_v13 }
 0x24e   :  { %vm929_vm15 = vcmp.ge.f32.partialorder %v916_v14, 0.0  ;;  %v937_v15 = vmul.f32 0.01, %v916_v14 }
 0x250   :  { %v945_v50 = vsel %vm929_vm15, %v916_v14, %v937_v15 }
 0x251   :  { %954 = vst.msk [vmem:[#allocation5 + $0x20] sm:$0xff] %vm949_vm11, %v945_v50 }
 0x253   :  { %v917_v56 = vpop.f32.mrf.mxu2 }
 0x254   :  { %v918_v16 = vadd.f32 %v1366_v51, %v917_v56 }
 0x256   :  { %vm930_vm0 = vcmp.ge.f32.partialorder %v918_v16, 0.0  ;;  %v938_v17 = vmul.f32 0.01, %v918_v16 }
 0x258   :  { %v946_v21 = vsel %vm930_vm0, %v918_v16, %v938_v17 }
 0x259   :  { %955 = vst.msk [vmem:[#allocation5 + $0x28] sm:$0xff] %vm949_vm11, %v946_v21 }
 0x25b   :  { %v920_v22 = vpop.f32.mrf.mxu2 }
 0x25c   :  { %v921_v23 = vadd.f32 %v1366_v51, %v920_v22 }
 0x25e   :  { %vm931_vm1 = vcmp.ge.f32.partialorder %v921_v23, 0.0  ;;  %v939_v24 = vmul.f32 0.01, %v921_v23 }
 0x260   :  { %v947_v25 = vsel %vm931_vm1, %v921_v23, %v939_v24 }
 0x261   :  { %956 = vst.msk [vmem:[#allocation5 + $0x30] sm:$0xff] %vm949_vm11, %v947_v25 }
 0x263   :  { %v922_v26 = vpop.f32.mrf.mxu2 }
 0x264   :  { %v923_v4 = vadd.f32 %v1366_v51, %v922_v26 }
 0x266   :  { %vm932_vm2 = vcmp.ge.f32.partialorder %v923_v4, 0.0  ;;  %v940_v2 = vmul.f32 0.01, %v923_v4 }
 0x268   :  { %v948_v5 = vsel %vm932_vm2, %v923_v4, %v940_v2 }
 0x269   :  { %957 = vst.msk [vmem:[#allocation5 + $0x38] sm:$0xff] %vm949_vm11, %v948_v5 }
 0x26a   :  { %970 = dma.vmem_to_hbm [thread:$0]  %s963_s11, 1024, %s965_s3, [#allocation4], %s1423_s1, %s1423_s1, %s1424_s14  }
 0x26b   :  { %1417 = dma.done.wait [#allocation4], 1024  }
 0x26c   :  { %1418 = vsyncadd [#allocation4], 4294966272 }
 0x26d   :  { %975 = vsyncpa [#allocation3], 1 }
 0x26e   :  { %976 = vsyncpa [#allocation4], 1 }

</bundles_post_ra>
